<compile_context>
chip_gen: v7x
topology: tpu7x:2x2x1
jax: 0.10.0
libtpu: 0.0.40
codegen_flags: <defaults>
</compile_context>

<pallas_src>
import functools

import jax
import jax.numpy as jnp
from jax.experimental import pallas as pl
from jax.experimental.pallas import tpu as pltpu


# ----------------------------------------------------------------------------
# Fused forward kernel
# ----------------------------------------------------------------------------
def _efcl_fused_kernel(
    # ---- inputs -------------------------------------------------------
    eeg_ref,        # (B, EEG) f32
    eye_ref,        # (B, EYE) f32
    w_ref,          # (EEG+EYE+2D+2D+H+H, W) f32 packed weight slab
    aux_ref,        # (B, H+8) f32 packed biases / uniforms / 1/temp
    int_ref,        # (B, 2+B+Q) i32 packed idx / labels / idx_queue
    # ---- outputs ------------------------------------------------------
    x_ref,                                     # (B, 4) log-probs
    loss_efc_ref, loss_efm_ref, loss_cls_ref,  # (1, 1) f32 [SMEM]
    *, B, EEG, EYE, D, Q, H,
):
    f32 = jnp.float32

    def dot(a, b):
        return jnp.dot(a, b, preferred_element_type=f32)

    def dot_nt(a, b):  # a @ b.T (contract feature dims)
        return jax.lax.dot_general(a, b, (((1,), (1,)), ((), ())),
                                   preferred_element_type=f32)

    # --- unpack weight slab (static, sublane-aligned row slices) ------------
    r = 0
    eeg_w = w_ref[r:r + EEG, 0:D]; r += EEG               # (EEG, D)
    eye_w = w_ref[r:r + EYE, 0:D]; r += EYE               # (EYE, D)
    eeg_q = w_ref[r:r + D, 0:Q]; r += D                   # (D, Q)
    eye_q = w_ref[r:r + D, 0:Q]; r += D                   # (D, Q)
    wv_top = w_ref[r:r + D, 0:H]                          # rows acting on eeg
    wv_bot = w_ref[r + D:r + 2 * D, 0:H]                  # rows acting on eye
    r += 2 * D
    wo = w_ref[r:r + H, 0:H]; r += H                      # (H, H)
    head_w = w_ref[r:r + H, 0:6]; r += H                  # [efm_w | cls_w]

    # --- unpack aux slab ------------------------------------------------
    eeg_b = aux_ref[0:1, 0:D]
    eye_b = aux_ref[1:2, 0:D]
    bv = aux_ref[2:3, 0:H]
    bo = aux_ref[3:4, 0:H]
    head_b = aux_ref[4:5, 0:6]
    inv_t = aux_ref[5:6, 0:1]                  # 1/temp, computed on the host
    u_e2f = aux_ref[:, H:H + 1]                # (B, 1) uniforms
    u_f2e = aux_ref[:, H + 1:H + 2]

    # --- unpack int slab -------------------------------------------------
    idx_col = int_ref[:, 0:1]                  # (B, 1)
    labels = int_ref[:, 1:2]                   # (B, 1)
    idx_row = int_ref[0:1, 2:2 + B]            # (1, B)
    idx_queue = int_ref[0:1, 2 + B:2 + B + Q]  # (1, Q)

    # --- encoders (Linear + ReLU approximation of EEG_SAM / EYE_SAM) --------
    eeg_emb = jnp.maximum(dot(eeg_ref[...], eeg_w) + eeg_b, 0.0)   # (B, D)
    eye_emb = jnp.maximum(dot(eye_ref[...], eye_w) + eye_b, 0.0)   # (B, D)
    # momentum encoders: copy_params at init + EMA of identical params => equal

    # --- similarity matrices (native layouts; s_ye is a transpose, not MXU) -
    s_ee = dot_nt(eeg_emb, eye_emb) * inv_t        # sim_e2f[:, :B]   (B, B)
    s_eq = dot(eeg_emb, eye_q) * inv_t             # sim_e2f[:, B:]   (B, Q)
    s_ye = s_ee.T                                  # sim_f2e[:, :B] == s_ee.T
    s_yq = dot(eye_emb, eeg_q) * inv_t             # sim_f2e[:, B:]   (B, Q)

    # --- contrastive soft targets: eq(idx, [idx.T | idx_queue]), row-norm ----
    pos_b = (idx_col == idx_row).astype(f32)       # (B, B)
    pos_q = (idx_col == idx_queue).astype(f32)     # (B, Q)
    denom = (jnp.sum(pos_b, axis=1, keepdims=True)
             + jnp.sum(pos_q, axis=1, keepdims=True))
    inv_denom = pl.reciprocal(denom)               # no VPU divide
    t_b = pos_b * inv_denom
    t_q = pos_q * inv_denom

    def split_soft_ce(sa, sb):
        # -sum(log_softmax([sa | sb]) * [t_b | t_q]) without materializing
        # the lane-wise concatenation.
        m = jnp.maximum(jnp.max(sa, axis=1, keepdims=True),
                        jnp.max(sb, axis=1, keepdims=True))
        lse = jnp.log(jnp.sum(jnp.exp(sa - m), axis=1, keepdims=True)
                      + jnp.sum(jnp.exp(sb - m), axis=1, keepdims=True))
        return -(jnp.sum(t_b * (sa - m - lse)) + jnp.sum(t_q * (sb - m - lse)))

    inv_b = 1.0 / float(B)
    loss_e2f = split_soft_ce(s_ee, s_eq) * inv_b
    loss_f2e = split_soft_ce(s_ye, s_yq) * inv_b
    loss_efc_ref[0, 0] = 0.5 * (loss_e2f + loss_f2e)

    # --- hard-negative sampling: multinomial(softmax(sim[:, :B] + 1e-4)) ----
    # Inverse-CDF on the UN-normalized cumulative sum (no softmax divide):
    # threshold is u * total.  NOTE: at B >= 256 switch the cumsum-by-matmul
    # to a log-step roll+add on the XLU.
    col_bb = jax.lax.broadcasted_iota(jnp.int32, (B, B), 1)
    row_bb = jax.lax.broadcasted_iota(jnp.int32, (B, B), 0)
    upper = (row_bb <= col_bb).astype(f32)

    def multinomial_onehot(logits, u):
        z = logits + 1e-4                              # matches torch literally
        z = jnp.exp(z - jnp.max(z, axis=1, keepdims=True))
        c = dot(z, upper)                              # per-row cumulative sum
        total = c[:, B - 1:B]                          # row sum == last column
        k = jnp.sum((c <= u * total).astype(jnp.int32), axis=1, keepdims=True)
        k = jnp.minimum(k, B - 1)
        return (col_bb == k).astype(f32)               # (B, B) one-hot rows

    sel_eye = multinomial_onehot(s_ee, u_e2f)          # eye negatives
    sel_eeg = multinomial_onehot(s_ye, u_f2e)          # eeg negatives
    eye_neg = dot(sel_eye, eye_emb)                    # gather via MXU
    eeg_neg = dot(sel_eeg, eeg_emb)

    # --- fusion block (single-token attention == two Linears), no scratch ---
    # v rows of [pos; eeg_neg|eye; eeg|eye_neg] formed from split wv halves.
    a_pos = dot(eeg_emb, wv_top)                       # (B, H)
    a_neg = dot(eeg_neg, wv_top)
    b_pos = dot(eye_emb, wv_bot)
    b_neg = dot(eye_neg, wv_bot)
    v = jnp.concatenate([a_pos + b_pos, a_neg + b_pos, a_pos + b_neg],
                        axis=0) + bv                   # (3B, H)
    fused = dot(v, wo) + bo                            # (3B, H)

    def log_softmax(s):
        m = jnp.max(s, axis=1, keepdims=True)
        z = s - m
        return z - jnp.log(jnp.sum(jnp.exp(z), axis=1, keepdims=True))

    # --- fused EFM + classifier heads: one (3B,H)@(H,6) matmul ---------------
    heads = dot(fused, head_w) + head_b                # (3B, 6)

    # EFM head (cols 0:2): cross-entropy with labels [1]*B + [0]*2B
    vl = heads[:, 0:2]
    row3 = jax.lax.broadcasted_iota(jnp.int32, (3 * B, 2), 0)
    col2 = jax.lax.broadcasted_iota(jnp.int32, (3 * B, 2), 1)
    efm_onehot = (col2 == jnp.where(row3 < B, 1, 0)).astype(f32)
    loss_efm_ref[0, 0] = -jnp.sum(log_softmax(vl) * efm_onehot) * (1.0 / (3 * B))

    # Classifier head (cols 2:6) on the positive fused rows (LogSoftmax+NLL)
    logits = heads[0:B, 2:6]
    logp = log_softmax(logits)
    x_ref[...] = logp
    col4 = jax.lax.broadcasted_iota(jnp.int32, (B, 4), 1)
    cls_onehot = (col4 == labels).astype(f32)
    loss_cls_ref[0, 0] = -jnp.sum(logp * cls_onehot) * inv_b


# ----------------------------------------------------------------------------
# Host-side packing (weight slab packed ONCE at init; aux/int slabs per call)
# ----------------------------------------------------------------------------
_VMEM = pl.BlockSpec(memory_space=pltpu.MemorySpace.VMEM)
_SMEM = pl.BlockSpec(memory_space=pltpu.MemorySpace.SMEM)


def _pad_cols(a, width):
    return jnp.pad(a, ((0, 0), (0, width - a.shape[1])))


def pack_weight_slab(p):
    """Row-stack every weight matrix into one f32 slab (packed once)."""
    H = p['fus_wv'].shape[1]
    head_w = jnp.concatenate([p['efm_w'], p['cls_w']], axis=1)   # (H, 6)
    width = max(p['eeg_w'].shape[1], p['eeg_queue'].shape[1], H, 6)
    return jnp.concatenate([
        _pad_cols(p['eeg_w'], width),
        _pad_cols(p['eye_w'], width),
        _pad_cols(p['eeg_queue'], width),
        _pad_cols(p['eye_queue'], width),
        _pad_cols(p['fus_wv'], width),
        _pad_cols(p['fus_wo'], width),
        _pad_cols(head_w, width),
    ], axis=0)


def _pack_aux_slab(p, u_e2f, u_f2e, B, D, H):
    aux = jnp.zeros((B, H + 8), jnp.float32)
    aux = aux.at[0, 0:D].set(p['eeg_b'][0])
    aux = aux.at[1, 0:D].set(p['eye_b'][0])
    aux = aux.at[2, 0:H].set(p['fus_bv'][0])
    aux = aux.at[3, 0:H].set(p['fus_bo'][0])
    aux = aux.at[4, 0:6].set(jnp.concatenate([p['efm_b'][0], p['cls_b'][0]]))
    aux = aux.at[5, 0].set(1.0 / p['temp'][0, 0])      # 1/temp from the host
    aux = aux.at[:, H].set(u_e2f)
    aux = aux.at[:, H + 1].set(u_f2e)
    return aux


def _pack_int_slab(idx, labels, idx_queue, B, Q):
    ints = jnp.zeros((B, 2 + B + Q), jnp.int32)
    ints = ints.at[:, 0].set(idx.astype(jnp.int32))
    ints = ints.at[:, 1].set(labels.astype(jnp.int32))
    ints = ints.at[0, 2:2 + B].set(idx.astype(jnp.int32))
    ints = ints.at[0, 2 + B:2 + B + Q].set(idx_queue.reshape(-1).astype(jnp.int32))
    return ints


def _efcl_pallas(eeg2, eye2, w_slab, aux, ints, *, B, EEG, EYE, D, Q, H):
    kernel = functools.partial(
        _efcl_fused_kernel, B=B, EEG=EEG, EYE=EYE, D=D, Q=Q, H=H)
    return pl.pallas_call(
        kernel,
        out_shape=(
            jax.ShapeDtypeStruct((B, 4), jnp.float32),   # x (log-probs)
            jax.ShapeDtypeStruct((1, 1), jnp.float32),   # loss_efc
            jax.ShapeDtypeStruct((1, 1), jnp.float32),   # loss_efm
            jax.ShapeDtypeStruct((1, 1), jnp.float32),   # loss_class
        ),
        in_specs=[_VMEM] * 5,
        out_specs=(_VMEM, _SMEM, _SMEM, _SMEM),
    )(eeg2, eye2, w_slab, aux, ints)


# ----------------------------------------------------------------------------
# Parameter setup (deterministic, synthetic) and forward pass
# ----------------------------------------------------------------------------
def init_params(key, eeg_dim, eye_dim, embed_dim, queue_size, temp=0.07):
    ks = jax.random.split(key, 8)
    s = 0.02
    H = 2 * embed_dim  # fused hidden width (== 32 for embed_dim=16)
    p = {
        'eeg_w': s * jax.random.normal(ks[0], (eeg_dim, embed_dim), jnp.float32),
        'eeg_b': jnp.zeros((1, embed_dim), jnp.float32),
        'eye_w': s * jax.random.normal(ks[1], (eye_dim, embed_dim), jnp.float32),
        'eye_b': jnp.zeros((1, embed_dim), jnp.float32),
        # single-token CrossAttention: q/k never affect the output (softmax
        # over a length-1 key axis == 1), so only the v / out projections
        # are parameterized here.
        'fus_wv': s * jax.random.normal(ks[2], (H, H), jnp.float32),
        'fus_bv': jnp.zeros((1, H), jnp.float32),
        'fus_wo': s * jax.random.normal(ks[3], (H, H), jnp.float32),
        'fus_bo': jnp.zeros((1, H), jnp.float32),
        'efm_w': s * jax.random.normal(ks[4], (H, 2), jnp.float32),
        'efm_b': jnp.zeros((1, 2), jnp.float32),
        'cls_w': s * jax.random.normal(ks[5], (H, 4), jnp.float32),
        'cls_b': jnp.zeros((1, 4), jnp.float32),
        'temp': jnp.full((1, 1), temp, jnp.float32),
    }
    eeg_q = jax.random.normal(ks[6], (embed_dim, queue_size), jnp.float32)
    eye_q = jax.random.normal(ks[7], (embed_dim, queue_size), jnp.float32)
    p['eeg_queue'] = eeg_q / jnp.linalg.norm(eeg_q, axis=0, keepdims=True)
    p['eye_queue'] = eye_q / jnp.linalg.norm(eye_q, axis=0, keepdims=True)
    p['idx_queue'] = jnp.zeros((1, queue_size), jnp.int32)
    # Pack all weight matrices into one slab ONCE -> 1 DMA instead of 11.
    p['w_slab'] = pack_weight_slab(p)
    return p


@jax.jit
def efcl_forward(p, eeg, eye, alpha, idx, labels, neg_key):
    del alpha  # present in the torch signature but unused in its forward body
    B = eeg.shape[0]
    EEG = p['eeg_w'].shape[0]
    EYE = p['eye_w'].shape[0]
    D = p['eeg_w'].shape[1]
    H = p['fus_wv'].shape[1]
    Q = p['eeg_queue'].shape[1]
    assert B >= 6, "aux slab layout needs at least 6 rows"

    # torch.squeeze + unsqueeze(1) + rearrange 'b c d -> b (c d)' glue
    eeg2 = eeg.reshape(B, -1)
    eye2 = eye.reshape(B, -1)

    # TODO(synk): torch.multinomial's RNG stream is replaced by in-kernel
    # inverse-CDF sampling driven by these uniforms (identical distribution
    # softmax(sim[:, :B] + 1e-4), different random stream).
    k1, k2 = jax.random.split(neg_key)
    u_e2f = jax.random.uniform(k1, (B,), jnp.float32)
    u_f2e = jax.random.uniform(k2, (B,), jnp.float32)

    aux = _pack_aux_slab(p, u_e2f, u_f2e, B, D, H)
    ints = _pack_int_slab(idx, labels, p['idx_queue'], B, Q)

    # TODO(synk): _dequeue_and_enqueue mutates queue buffers (pure state
    # update with no effect on the returned losses); omitted here.
    x, l_efc, l_efm, l_cls = _efcl_pallas(
        eeg2, eye2, p['w_slab'], aux, ints,
        B=B, EEG=EEG, EYE=EYE, D=D, Q=Q, H=H)
    return l_efc[0, 0], l_efm[0, 0], l_cls[0, 0], x


# ----------------------------------------------------------------------------
if __name__ == "__main__":
    # B is a multiple of 8 so every row dimension fills full sublane tiles.
    B, EEG_DIM, EYE_DIM, EMBED_DIM, QUEUE = 8, 64, 48, 16, 16

    key = jax.random.PRNGKey(0)
    k_param, k_eeg, k_eye, k_neg = jax.random.split(key, 4)

    params = init_params(k_param, EEG_DIM, EYE_DIM, EMBED_DIM, QUEUE, temp=0.07)

    eeg = jax.random.normal(k_eeg, (B, 1, EEG_DIM), jnp.float32)
    eye = jax.random.normal(k_eye, (B, 1, EYE_DIM), jnp.float32)
    idx = jnp.arange(1, B + 1, dtype=jnp.int32)
    labels = jnp.arange(B, dtype=jnp.int32) % 4
    alpha = 0.4

    loss_efc, loss_efm, loss_class, x = efcl_forward(
        params, eeg, eye, alpha, idx, labels, k_neg)

    jax.block_until_ready((loss_efc, loss_efm, loss_class, x))
    assert x.shape == (B, 4)
    print("KERNEL_OK")
</pallas_src>

<mosaic_0001>
module attributes {stable_mosaic.version = 11 : i64} {
  func.func @_efcl_fused_kernel(%arg0: memref<8x64xf32, #tpu.memory_space<vmem>>, %arg1: memref<8x48xf32, #tpu.memory_space<vmem>>, %arg2: memref<240x32xf32, #tpu.memory_space<vmem>>, %arg3: memref<8x40xf32, #tpu.memory_space<vmem>>, %arg4: memref<8x26xi32, #tpu.memory_space<vmem>>, %arg5: memref<8x4xf32, #tpu.memory_space<vmem>>, %arg6: memref<1x1xf32, #tpu.memory_space<smem>>, %arg7: memref<1x1xf32, #tpu.memory_space<smem>>, %arg8: memref<1x1xf32, #tpu.memory_space<smem>>) attributes {dimension_semantics = [], scalar_prefetch = 0 : i64, scratch_operands = 0 : i64, tpu.core_type = #tpu.core_type<tc>} {
    %c0 = arith.constant 0 : index
    %c0_0 = arith.constant 0 : index
    %0 = vector.load %arg2[%c0, %c0_0] : memref<240x32xf32, #tpu.memory_space<vmem>>, vector<64x16xf32>
    %c64 = arith.constant 64 : index
    %c0_1 = arith.constant 0 : index
    %1 = vector.load %arg2[%c64, %c0_1] : memref<240x32xf32, #tpu.memory_space<vmem>>, vector<48x16xf32>
    %c112 = arith.constant 112 : index
    %c0_2 = arith.constant 0 : index
    %2 = vector.load %arg2[%c112, %c0_2] : memref<240x32xf32, #tpu.memory_space<vmem>>, vector<16x16xf32>
    %c128 = arith.constant 128 : index
    %c0_3 = arith.constant 0 : index
    %3 = vector.load %arg2[%c128, %c0_3] : memref<240x32xf32, #tpu.memory_space<vmem>>, vector<16x16xf32>
    %c144 = arith.constant 144 : index
    %c0_4 = arith.constant 0 : index
    %4 = vector.load %arg2[%c144, %c0_4] : memref<240x32xf32, #tpu.memory_space<vmem>>, vector<16x32xf32>
    %c160 = arith.constant 160 : index
    %c0_5 = arith.constant 0 : index
    %5 = vector.load %arg2[%c160, %c0_5] : memref<240x32xf32, #tpu.memory_space<vmem>>, vector<16x32xf32>
    %c176 = arith.constant 176 : index
    %c0_6 = arith.constant 0 : index
    %6 = vector.load %arg2[%c176, %c0_6] : memref<240x32xf32, #tpu.memory_space<vmem>>, vector<32x32xf32>
    %c208 = arith.constant 208 : index
    %c0_7 = arith.constant 0 : index
    %7 = vector.load %arg2[%c208, %c0_7] : memref<240x32xf32, #tpu.memory_space<vmem>>, vector<32x6xf32>
    %c0_8 = arith.constant 0 : index
    %c0_9 = arith.constant 0 : index
    %8 = vector.load %arg3[%c0_8, %c0_9] : memref<8x40xf32, #tpu.memory_space<vmem>>, vector<1x16xf32>
    %c1 = arith.constant 1 : index
    %c0_10 = arith.constant 0 : index
    %9 = vector.load %arg3[%c1, %c0_10] : memref<8x40xf32, #tpu.memory_space<vmem>>, vector<1x16xf32>
    %c2 = arith.constant 2 : index
    %c0_11 = arith.constant 0 : index
    %10 = vector.load %arg3[%c2, %c0_11] : memref<8x40xf32, #tpu.memory_space<vmem>>, vector<1x32xf32>
    %c3 = arith.constant 3 : index
    %c0_12 = arith.constant 0 : index
    %11 = vector.load %arg3[%c3, %c0_12] : memref<8x40xf32, #tpu.memory_space<vmem>>, vector<1x32xf32>
    %c4 = arith.constant 4 : index
    %c0_13 = arith.constant 0 : index
    %12 = vector.load %arg3[%c4, %c0_13] : memref<8x40xf32, #tpu.memory_space<vmem>>, vector<1x6xf32>
    %c5 = arith.constant 5 : index
    %c0_14 = arith.constant 0 : index
    %13 = vector.load %arg3[%c5, %c0_14] : memref<8x40xf32, #tpu.memory_space<vmem>>, vector<1x1xf32>
    %c0_15 = arith.constant 0 : index
    %c32 = arith.constant 32 : index
    %14 = vector.load %arg3[%c0_15, %c32] : memref<8x40xf32, #tpu.memory_space<vmem>>, vector<8x1xf32>
    %c0_16 = arith.constant 0 : index
    %c33 = arith.constant 33 : index
    %15 = vector.load %arg3[%c0_16, %c33] : memref<8x40xf32, #tpu.memory_space<vmem>>, vector<8x1xf32>
    %c0_17 = arith.constant 0 : index
    %c0_18 = arith.constant 0 : index
    %16 = vector.load %arg4[%c0_17, %c0_18] : memref<8x26xi32, #tpu.memory_space<vmem>>, vector<8x1xi32>
    %c0_19 = arith.constant 0 : index
    %c1_20 = arith.constant 1 : index
    %17 = vector.load %arg4[%c0_19, %c1_20] : memref<8x26xi32, #tpu.memory_space<vmem>>, vector<8x1xi32>
    %c0_21 = arith.constant 0 : index
    %c2_22 = arith.constant 2 : index
    %18 = vector.load %arg4[%c0_21, %c2_22] : memref<8x26xi32, #tpu.memory_space<vmem>>, vector<1x8xi32>
    %c0_23 = arith.constant 0 : index
    %c10 = arith.constant 10 : index
    %19 = vector.load %arg4[%c0_23, %c10] : memref<8x26xi32, #tpu.memory_space<vmem>>, vector<1x16xi32>
    %c0_24 = arith.constant 0 : index
    %c0_25 = arith.constant 0 : index
    %20 = vector.load %arg0[%c0_24, %c0_25] : memref<8x64xf32, #tpu.memory_space<vmem>>, vector<8x64xf32>
    %cst = arith.constant dense<0.000000e+00> : vector<8x16xf32>
    %21 = tpu.matmul %20, %0, %cst {dimension_numbers = #tpu.dot_dimension_numbers<[1], [0], [0], [1], [0, 0, 1, 1], [], []>} : vector<8x64xf32>, vector<64x16xf32>, vector<8x16xf32> -> vector<8x16xf32>
    %22 = vector.broadcast %8 : vector<1x16xf32> to vector<8x16xf32>
    %23 = arith.addf %21, %22 : vector<8x16xf32>
    %cst_26 = arith.constant 0.000000e+00 : f32
    %24 = vector.broadcast %cst_26 : f32 to vector<8x16xf32>
    %25 = arith.maximumf %23, %24 : vector<8x16xf32>
    %c0_27 = arith.constant 0 : index
    %c0_28 = arith.constant 0 : index
    %26 = vector.load %arg1[%c0_27, %c0_28] : memref<8x48xf32, #tpu.memory_space<vmem>>, vector<8x48xf32>
    %cst_29 = arith.constant dense<0.000000e+00> : vector<8x16xf32>
    %27 = tpu.matmul %26, %1, %cst_29 {dimension_numbers = #tpu.dot_dimension_numbers<[1], [0], [0], [1], [0, 0, 1, 1], [], []>} : vector<8x48xf32>, vector<48x16xf32>, vector<8x16xf32> -> vector<8x16xf32>
    %28 = vector.broadcast %9 : vector<1x16xf32> to vector<8x16xf32>
    %29 = arith.addf %27, %28 : vector<8x16xf32>
    %cst_30 = arith.constant 0.000000e+00 : f32
    %30 = vector.broadcast %cst_30 : f32 to vector<8x16xf32>
    %31 = arith.maximumf %29, %30 : vector<8x16xf32>
    %cst_31 = arith.constant dense<0.000000e+00> : vector<8x8xf32>
    %32 = tpu.matmul %25, %31, %cst_31 {dimension_numbers = #tpu.dot_dimension_numbers<[1], [1], [0], [0], [0, 0, 1, 0], [], []>} : vector<8x16xf32>, vector<8x16xf32>, vector<8x8xf32> -> vector<8x8xf32>
    %33 = vector.broadcast %13 : vector<1x1xf32> to vector<8x8xf32>
    %34 = arith.mulf %32, %33 : vector<8x8xf32>
    %cst_32 = arith.constant dense<0.000000e+00> : vector<8x16xf32>
    %35 = tpu.matmul %25, %3, %cst_32 {dimension_numbers = #tpu.dot_dimension_numbers<[1], [0], [0], [1], [0, 0, 1, 1], [], []>} : vector<8x16xf32>, vector<16x16xf32>, vector<8x16xf32> -> vector<8x16xf32>
    %36 = vector.broadcast %13 : vector<1x1xf32> to vector<8x16xf32>
    %37 = arith.mulf %35, %36 : vector<8x16xf32>
    %38 = tpu.transpose %34, [1, 0] : vector<8x8xf32> -> vector<8x8xf32>
    %cst_33 = arith.constant dense<0.000000e+00> : vector<8x16xf32>
    %39 = tpu.matmul %31, %2, %cst_33 {dimension_numbers = #tpu.dot_dimension_numbers<[1], [0], [0], [1], [0, 0, 1, 1], [], []>} : vector<8x16xf32>, vector<16x16xf32>, vector<8x16xf32> -> vector<8x16xf32>
    %40 = vector.broadcast %13 : vector<1x1xf32> to vector<8x16xf32>
    %41 = arith.mulf %39, %40 : vector<8x16xf32>
    %42 = vector.broadcast %16 : vector<8x1xi32> to vector<8x8xi32>
    %43 = vector.broadcast %18 : vector<1x8xi32> to vector<8x8xi32>
    %44 = arith.cmpi eq, %42, %43 : vector<8x8xi32>
    %45 = arith.extui %44 : vector<8x8xi1> to vector<8x8xi32>
    %46 = arith.sitofp %45 : vector<8x8xi32> to vector<8x8xf32>
    %47 = vector.broadcast %16 : vector<8x1xi32> to vector<8x16xi32>
    %48 = vector.broadcast %19 : vector<1x16xi32> to vector<8x16xi32>
    %49 = arith.cmpi eq, %47, %48 : vector<8x16xi32>
    %50 = arith.extui %49 : vector<8x16xi1> to vector<8x16xi32>
    %51 = arith.sitofp %50 : vector<8x16xi32> to vector<8x16xf32>
    %cst_34 = arith.constant dense<0.000000e+00> : vector<8xf32>
    %52 = vector.multi_reduction <add>, %46, %cst_34 [1] : vector<8x8xf32> to vector<8xf32>
    %53 = vector.shape_cast %52 : vector<8xf32> to vector<8x1xf32>
    %cst_35 = arith.constant dense<0.000000e+00> : vector<8xf32>
    %54 = vector.multi_reduction <add>, %51, %cst_35 [1] : vector<8x16xf32> to vector<8xf32>
    %55 = vector.shape_cast %54 : vector<8xf32> to vector<8x1xf32>
    %56 = arith.addf %53, %55 : vector<8x1xf32>
    %57 = tpu.reciprocal %56 : vector<8x1xf32> -> vector<8x1xf32>
    %58 = vector.broadcast %57 : vector<8x1xf32> to vector<8x8xf32>
    %59 = arith.mulf %46, %58 : vector<8x8xf32>
    %60 = vector.broadcast %57 : vector<8x1xf32> to vector<8x16xf32>
    %61 = arith.mulf %51, %60 : vector<8x16xf32>
    %cst_36 = arith.constant dense<0xFF800000> : vector<8xf32>
    %62 = vector.multi_reduction <maximumf>, %34, %cst_36 [1] : vector<8x8xf32> to vector<8xf32>
    %63 = vector.shape_cast %62 : vector<8xf32> to vector<8x1xf32>
    %cst_37 = arith.constant dense<0xFF800000> : vector<8xf32>
    %64 = vector.multi_reduction <maximumf>, %37, %cst_37 [1] : vector<8x16xf32> to vector<8xf32>
    %65 = vector.shape_cast %64 : vector<8xf32> to vector<8x1xf32>
    %66 = arith.maximumf %63, %65 : vector<8x1xf32>
    %67 = vector.broadcast %66 : vector<8x1xf32> to vector<8x8xf32>
    %68 = arith.subf %34, %67 : vector<8x8xf32>
    %69 = math.exp %68 : vector<8x8xf32>
    %cst_38 = arith.constant dense<0.000000e+00> : vector<8xf32>
    %70 = vector.multi_reduction <add>, %69, %cst_38 [1] : vector<8x8xf32> to vector<8xf32>
    %71 = vector.shape_cast %70 : vector<8xf32> to vector<8x1xf32>
    %72 = vector.broadcast %66 : vector<8x1xf32> to vector<8x16xf32>
    %73 = arith.subf %37, %72 : vector<8x16xf32>
    %74 = math.exp %73 : vector<8x16xf32>
    %cst_39 = arith.constant dense<0.000000e+00> : vector<8xf32>
    %75 = vector.multi_reduction <add>, %74, %cst_39 [1] : vector<8x16xf32> to vector<8xf32>
    %76 = vector.shape_cast %75 : vector<8xf32> to vector<8x1xf32>
    %77 = arith.addf %71, %76 : vector<8x1xf32>
    %78 = math.log %77 : vector<8x1xf32>
    %79 = vector.broadcast %66 : vector<8x1xf32> to vector<8x8xf32>
    %80 = arith.subf %34, %79 : vector<8x8xf32>
    %81 = vector.broadcast %78 : vector<8x1xf32> to vector<8x8xf32>
    %82 = arith.subf %80, %81 : vector<8x8xf32>
    %83 = arith.mulf %59, %82 : vector<8x8xf32>
    %84 = vector.shape_cast %83 : vector<8x8xf32> to vector<1x8x8xf32>
    %cst_40 = arith.constant dense<0.000000e+00> : vector<1xf32>
    %85 = vector.multi_reduction <add>, %84, %cst_40 [1, 2] : vector<1x8x8xf32> to vector<1xf32>
    %86 = vector.shape_cast %85 : vector<1xf32> to vector<1x1x1xf32>
    %87 = vector.extract %86[0, 0, 0] : f32 from vector<1x1x1xf32>
    %88 = vector.broadcast %66 : vector<8x1xf32> to vector<8x16xf32>
    %89 = arith.subf %37, %88 : vector<8x16xf32>
    %90 = vector.broadcast %78 : vector<8x1xf32> to vector<8x16xf32>
    %91 = arith.subf %89, %90 : vector<8x16xf32>
    %92 = arith.mulf %61, %91 : vector<8x16xf32>
    %93 = vector.shape_cast %92 : vector<8x16xf32> to vector<1x8x16xf32>
    %cst_41 = arith.constant dense<0.000000e+00> : vector<1xf32>
    %94 = vector.multi_reduction <add>, %93, %cst_41 [1, 2] : vector<1x8x16xf32> to vector<1xf32>
    %95 = vector.shape_cast %94 : vector<1xf32> to vector<1x1x1xf32>
    %96 = vector.extract %95[0, 0, 0] : f32 from vector<1x1x1xf32>
    %97 = arith.addf %87, %96 : f32
    %cst_42 = arith.constant 0.000000e+00 : f32
    %98 = arith.subf %cst_42, %97 : f32
    %cst_43 = arith.constant 1.250000e-01 : f32
    %99 = arith.mulf %98, %cst_43 : f32
    %cst_44 = arith.constant dense<0xFF800000> : vector<8xf32>
    %100 = vector.multi_reduction <maximumf>, %38, %cst_44 [1] : vector<8x8xf32> to vector<8xf32>
    %101 = vector.shape_cast %100 : vector<8xf32> to vector<8x1xf32>
    %cst_45 = arith.constant dense<0xFF800000> : vector<8xf32>
    %102 = vector.multi_reduction <maximumf>, %41, %cst_45 [1] : vector<8x16xf32> to vector<8xf32>
    %103 = vector.shape_cast %102 : vector<8xf32> to vector<8x1xf32>
    %104 = arith.maximumf %101, %103 : vector<8x1xf32>
    %105 = vector.broadcast %104 : vector<8x1xf32> to vector<8x8xf32>
    %106 = arith.subf %38, %105 : vector<8x8xf32>
    %107 = math.exp %106 : vector<8x8xf32>
    %cst_46 = arith.constant dense<0.000000e+00> : vector<8xf32>
    %108 = vector.multi_reduction <add>, %107, %cst_46 [1] : vector<8x8xf32> to vector<8xf32>
    %109 = vector.shape_cast %108 : vector<8xf32> to vector<8x1xf32>
    %110 = vector.broadcast %104 : vector<8x1xf32> to vector<8x16xf32>
    %111 = arith.subf %41, %110 : vector<8x16xf32>
    %112 = math.exp %111 : vector<8x16xf32>
    %cst_47 = arith.constant dense<0.000000e+00> : vector<8xf32>
    %113 = vector.multi_reduction <add>, %112, %cst_47 [1] : vector<8x16xf32> to vector<8xf32>
    %114 = vector.shape_cast %113 : vector<8xf32> to vector<8x1xf32>
    %115 = arith.addf %109, %114 : vector<8x1xf32>
    %116 = math.log %115 : vector<8x1xf32>
    %117 = vector.broadcast %104 : vector<8x1xf32> to vector<8x8xf32>
    %118 = arith.subf %38, %117 : vector<8x8xf32>
    %119 = vector.broadcast %116 : vector<8x1xf32> to vector<8x8xf32>
    %120 = arith.subf %118, %119 : vector<8x8xf32>
    %121 = arith.mulf %59, %120 : vector<8x8xf32>
    %122 = vector.shape_cast %121 : vector<8x8xf32> to vector<1x8x8xf32>
    %cst_48 = arith.constant dense<0.000000e+00> : vector<1xf32>
    %123 = vector.multi_reduction <add>, %122, %cst_48 [1, 2] : vector<1x8x8xf32> to vector<1xf32>
    %124 = vector.shape_cast %123 : vector<1xf32> to vector<1x1x1xf32>
    %125 = vector.extract %124[0, 0, 0] : f32 from vector<1x1x1xf32>
    %126 = vector.broadcast %104 : vector<8x1xf32> to vector<8x16xf32>
    %127 = arith.subf %41, %126 : vector<8x16xf32>
    %128 = vector.broadcast %116 : vector<8x1xf32> to vector<8x16xf32>
    %129 = arith.subf %127, %128 : vector<8x16xf32>
    %130 = arith.mulf %61, %129 : vector<8x16xf32>
    %131 = vector.shape_cast %130 : vector<8x16xf32> to vector<1x8x16xf32>
    %cst_49 = arith.constant dense<0.000000e+00> : vector<1xf32>
    %132 = vector.multi_reduction <add>, %131, %cst_49 [1, 2] : vector<1x8x16xf32> to vector<1xf32>
    %133 = vector.shape_cast %132 : vector<1xf32> to vector<1x1x1xf32>
    %134 = vector.extract %133[0, 0, 0] : f32 from vector<1x1x1xf32>
    %135 = arith.addf %125, %134 : f32
    %cst_50 = arith.constant 0.000000e+00 : f32
    %136 = arith.subf %cst_50, %135 : f32
    %cst_51 = arith.constant 1.250000e-01 : f32
    %137 = arith.mulf %136, %cst_51 : f32
    %138 = arith.addf %99, %137 : f32
    %cst_52 = arith.constant 5.000000e-01 : f32
    %139 = arith.mulf %cst_52, %138 : f32
    %c0_53 = arith.constant 0 : index
    %c0_54 = arith.constant 0 : index
    %140 = memref.load %arg6[%c0_53, %c0_54] : memref<1x1xf32, #tpu.memory_space<smem>>
    memref.store %139, %arg6[%c0_53, %c0_54] : memref<1x1xf32, #tpu.memory_space<smem>>
    %141 = tpu.iota {dimensions = array<i32: 1>} : vector<8x8xi32>
    %142 = tpu.iota {dimensions = array<i32: 0>} : vector<8x8xi32>
    %143 = arith.cmpi sle, %142, %141 : vector<8x8xi32>
    %144 = arith.extui %143 : vector<8x8xi1> to vector<8x8xi32>
    %145 = arith.sitofp %144 : vector<8x8xi32> to vector<8x8xf32>
    %cst_55 = arith.constant 9.99999974E-5 : f32
    %146 = vector.broadcast %cst_55 : f32 to vector<8x8xf32>
    %147 = arith.addf %34, %146 : vector<8x8xf32>
    %cst_56 = arith.constant dense<0xFF800000> : vector<8xf32>
    %148 = vector.multi_reduction <maximumf>, %147, %cst_56 [1] : vector<8x8xf32> to vector<8xf32>
    %149 = vector.shape_cast %148 : vector<8xf32> to vector<8x1xf32>
    %150 = vector.broadcast %149 : vector<8x1xf32> to vector<8x8xf32>
    %151 = arith.subf %147, %150 : vector<8x8xf32>
    %152 = math.exp %151 : vector<8x8xf32>
    %cst_57 = arith.constant dense<0.000000e+00> : vector<8x8xf32>
    %153 = tpu.matmul %152, %145, %cst_57 {dimension_numbers = #tpu.dot_dimension_numbers<[1], [0], [0], [1], [0, 0, 1, 1], [], []>} : vector<8x8xf32>, vector<8x8xf32>, vector<8x8xf32> -> vector<8x8xf32>
    %154 = vector.extract_strided_slice %153 {offsets = [0, 7], sizes = [8, 1], strides = [1, 1]} : vector<8x8xf32> to vector<8x1xf32>
    %155 = arith.mulf %14, %154 : vector<8x1xf32>
    %156 = vector.broadcast %155 : vector<8x1xf32> to vector<8x8xf32>
    %157 = arith.cmpf ole, %153, %156 : vector<8x8xf32>
    %158 = arith.extui %157 : vector<8x8xi1> to vector<8x8xi32>
    %cst_58 = arith.constant dense<0> : vector<8xi32>
    %159 = vector.multi_reduction <add>, %158, %cst_58 [1] : vector<8x8xi32> to vector<8xi32>
    %160 = vector.shape_cast %159 : vector<8xi32> to vector<8x1xi32>
    %c7_i32 = arith.constant 7 : i32
    %161 = vector.broadcast %c7_i32 : i32 to vector<8x1xi32>
    %162 = arith.minsi %160, %161 : vector<8x1xi32>
    %163 = vector.broadcast %162 : vector<8x1xi32> to vector<8x8xi32>
    %164 = arith.cmpi eq, %141, %163 : vector<8x8xi32>
    %165 = arith.extui %164 : vector<8x8xi1> to vector<8x8xi32>
    %166 = arith.sitofp %165 : vector<8x8xi32> to vector<8x8xf32>
    %cst_59 = arith.constant 9.99999974E-5 : f32
    %167 = vector.broadcast %cst_59 : f32 to vector<8x8xf32>
    %168 = arith.addf %38, %167 : vector<8x8xf32>
    %cst_60 = arith.constant dense<0xFF800000> : vector<8xf32>
    %169 = vector.multi_reduction <maximumf>, %168, %cst_60 [1] : vector<8x8xf32> to vector<8xf32>
    %170 = vector.shape_cast %169 : vector<8xf32> to vector<8x1xf32>
    %171 = vector.broadcast %170 : vector<8x1xf32> to vector<8x8xf32>
    %172 = arith.subf %168, %171 : vector<8x8xf32>
    %173 = math.exp %172 : vector<8x8xf32>
    %cst_61 = arith.constant dense<0.000000e+00> : vector<8x8xf32>
    %174 = tpu.matmul %173, %145, %cst_61 {dimension_numbers = #tpu.dot_dimension_numbers<[1], [0], [0], [1], [0, 0, 1, 1], [], []>} : vector<8x8xf32>, vector<8x8xf32>, vector<8x8xf32> -> vector<8x8xf32>
    %175 = vector.extract_strided_slice %174 {offsets = [0, 7], sizes = [8, 1], strides = [1, 1]} : vector<8x8xf32> to vector<8x1xf32>
    %176 = arith.mulf %15, %175 : vector<8x1xf32>
    %177 = vector.broadcast %176 : vector<8x1xf32> to vector<8x8xf32>
    %178 = arith.cmpf ole, %174, %177 : vector<8x8xf32>
    %179 = arith.extui %178 : vector<8x8xi1> to vector<8x8xi32>
    %cst_62 = arith.constant dense<0> : vector<8xi32>
    %180 = vector.multi_reduction <add>, %179, %cst_62 [1] : vector<8x8xi32> to vector<8xi32>
    %181 = vector.shape_cast %180 : vector<8xi32> to vector<8x1xi32>
    %c7_i32_63 = arith.constant 7 : i32
    %182 = vector.broadcast %c7_i32_63 : i32 to vector<8x1xi32>
    %183 = arith.minsi %181, %182 : vector<8x1xi32>
    %184 = vector.broadcast %183 : vector<8x1xi32> to vector<8x8xi32>
    %185 = arith.cmpi eq, %141, %184 : vector<8x8xi32>
    %186 = arith.extui %185 : vector<8x8xi1> to vector<8x8xi32>
    %187 = arith.sitofp %186 : vector<8x8xi32> to vector<8x8xf32>
    %cst_64 = arith.constant dense<0.000000e+00> : vector<8x16xf32>
    %188 = tpu.matmul %166, %31, %cst_64 {dimension_numbers = #tpu.dot_dimension_numbers<[1], [0], [0], [1], [0, 0, 1, 1], [], []>} : vector<8x8xf32>, vector<8x16xf32>, vector<8x16xf32> -> vector<8x16xf32>
    %cst_65 = arith.constant dense<0.000000e+00> : vector<8x16xf32>
    %189 = tpu.matmul %187, %25, %cst_65 {dimension_numbers = #tpu.dot_dimension_numbers<[1], [0], [0], [1], [0, 0, 1, 1], [], []>} : vector<8x8xf32>, vector<8x16xf32>, vector<8x16xf32> -> vector<8x16xf32>
    %cst_66 = arith.constant dense<0.000000e+00> : vector<8x32xf32>
    %190 = tpu.matmul %25, %4, %cst_66 {dimension_numbers = #tpu.dot_dimension_numbers<[1], [0], [0], [1], [0, 0, 1, 1], [], []>} : vector<8x16xf32>, vector<16x32xf32>, vector<8x32xf32> -> vector<8x32xf32>
    %cst_67 = arith.constant dense<0.000000e+00> : vector<8x32xf32>
    %191 = tpu.matmul %189, %4, %cst_67 {dimension_numbers = #tpu.dot_dimension_numbers<[1], [0], [0], [1], [0, 0, 1, 1], [], []>} : vector<8x16xf32>, vector<16x32xf32>, vector<8x32xf32> -> vector<8x32xf32>
    %cst_68 = arith.constant dense<0.000000e+00> : vector<8x32xf32>
    %192 = tpu.matmul %31, %5, %cst_68 {dimension_numbers = #tpu.dot_dimension_numbers<[1], [0], [0], [1], [0, 0, 1, 1], [], []>} : vector<8x16xf32>, vector<16x32xf32>, vector<8x32xf32> -> vector<8x32xf32>
    %cst_69 = arith.constant dense<0.000000e+00> : vector<8x32xf32>
    %193 = tpu.matmul %188, %5, %cst_69 {dimension_numbers = #tpu.dot_dimension_numbers<[1], [0], [0], [1], [0, 0, 1, 1], [], []>} : vector<8x16xf32>, vector<16x32xf32>, vector<8x32xf32> -> vector<8x32xf32>
    %194 = arith.addf %190, %192 : vector<8x32xf32>
    %195 = arith.addf %191, %192 : vector<8x32xf32>
    %196 = arith.addf %190, %193 : vector<8x32xf32>
    %197 = tpu.concatenate %194, %195, %196 in 0 : vector<8x32xf32>, vector<8x32xf32>, vector<8x32xf32> -> vector<24x32xf32>
    %198 = vector.broadcast %10 : vector<1x32xf32> to vector<24x32xf32>
    %199 = arith.addf %197, %198 : vector<24x32xf32>
    %cst_70 = arith.constant dense<0.000000e+00> : vector<24x32xf32>
    %200 = tpu.matmul %199, %6, %cst_70 {dimension_numbers = #tpu.dot_dimension_numbers<[1], [0], [0], [1], [0, 0, 1, 1], [], []>} : vector<24x32xf32>, vector<32x32xf32>, vector<24x32xf32> -> vector<24x32xf32>
    %201 = vector.broadcast %11 : vector<1x32xf32> to vector<24x32xf32>
    %202 = arith.addf %200, %201 : vector<24x32xf32>
    %cst_71 = arith.constant dense<0.000000e+00> : vector<24x6xf32>
    %203 = tpu.matmul %202, %7, %cst_71 {dimension_numbers = #tpu.dot_dimension_numbers<[1], [0], [0], [1], [0, 0, 1, 1], [], []>} : vector<24x32xf32>, vector<32x6xf32>, vector<24x6xf32> -> vector<24x6xf32>
    %204 = vector.broadcast %12 : vector<1x6xf32> to vector<24x6xf32>
    %205 = arith.addf %203, %204 : vector<24x6xf32>
    %206 = vector.extract_strided_slice %205 {offsets = [0, 0], sizes = [24, 2], strides = [1, 1]} : vector<24x6xf32> to vector<24x2xf32>
    %207 = tpu.iota {dimensions = array<i32: 0>} : vector<24x2xi32>
    %208 = tpu.iota {dimensions = array<i32: 1>} : vector<24x2xi32>
    %c8_i32 = arith.constant 8 : i32
    %209 = vector.broadcast %c8_i32 : i32 to vector<24x2xi32>
    %210 = arith.cmpi slt, %207, %209 : vector<24x2xi32>
    %c1_i32 = arith.constant 1 : i32
    %c0_i32 = arith.constant 0 : i32
    %211 = vector.broadcast %c1_i32 : i32 to vector<24x2xi32>
    %212 = vector.broadcast %c0_i32 : i32 to vector<24x2xi32>
    %213 = arith.select %210, %211, %212 : vector<24x2xi1>, vector<24x2xi32>
    %214 = arith.cmpi eq, %208, %213 : vector<24x2xi32>
    %215 = arith.extui %214 : vector<24x2xi1> to vector<24x2xi32>
    %216 = arith.sitofp %215 : vector<24x2xi32> to vector<24x2xf32>
    %cst_72 = arith.constant dense<0xFF800000> : vector<24xf32>
    %217 = vector.multi_reduction <maximumf>, %206, %cst_72 [1] : vector<24x2xf32> to vector<24xf32>
    %218 = vector.shape_cast %217 : vector<24xf32> to vector<24x1xf32>
    %219 = vector.broadcast %218 : vector<24x1xf32> to vector<24x2xf32>
    %220 = arith.subf %206, %219 : vector<24x2xf32>
    %221 = math.exp %220 : vector<24x2xf32>
    %cst_73 = arith.constant dense<0.000000e+00> : vector<24xf32>
    %222 = vector.multi_reduction <add>, %221, %cst_73 [1] : vector<24x2xf32> to vector<24xf32>
    %223 = vector.shape_cast %222 : vector<24xf32> to vector<24x1xf32>
    %224 = math.log %223 : vector<24x1xf32>
    %225 = vector.broadcast %224 : vector<24x1xf32> to vector<24x2xf32>
    %226 = arith.subf %220, %225 : vector<24x2xf32>
    %227 = arith.mulf %226, %216 : vector<24x2xf32>
    %228 = vector.shape_cast %227 : vector<24x2xf32> to vector<1x24x2xf32>
    %cst_74 = arith.constant dense<0.000000e+00> : vector<1xf32>
    %229 = vector.multi_reduction <add>, %228, %cst_74 [1, 2] : vector<1x24x2xf32> to vector<1xf32>
    %230 = vector.shape_cast %229 : vector<1xf32> to vector<1x1x1xf32>
    %231 = vector.extract %230[0, 0, 0] : f32 from vector<1x1x1xf32>
    %cst_75 = arith.constant 0.000000e+00 : f32
    %232 = arith.subf %cst_75, %231 : f32
    %cst_76 = arith.constant 0.0416666679 : f32
    %233 = arith.mulf %232, %cst_76 : f32
    %c0_77 = arith.constant 0 : index
    %c0_78 = arith.constant 0 : index
    %234 = memref.load %arg7[%c0_77, %c0_78] : memref<1x1xf32, #tpu.memory_space<smem>>
    memref.store %233, %arg7[%c0_77, %c0_78] : memref<1x1xf32, #tpu.memory_space<smem>>
    %235 = vector.extract_strided_slice %205 {offsets = [0, 2], sizes = [8, 4], strides = [1, 1]} : vector<24x6xf32> to vector<8x4xf32>
    %cst_79 = arith.constant dense<0xFF800000> : vector<8xf32>
    %236 = vector.multi_reduction <maximumf>, %235, %cst_79 [1] : vector<8x4xf32> to vector<8xf32>
    %237 = vector.shape_cast %236 : vector<8xf32> to vector<8x1xf32>
    %238 = vector.broadcast %237 : vector<8x1xf32> to vector<8x4xf32>
    %239 = arith.subf %235, %238 : vector<8x4xf32>
    %240 = math.exp %239 : vector<8x4xf32>
    %cst_80 = arith.constant dense<0.000000e+00> : vector<8xf32>
    %241 = vector.multi_reduction <add>, %240, %cst_80 [1] : vector<8x4xf32> to vector<8xf32>
    %242 = vector.shape_cast %241 : vector<8xf32> to vector<8x1xf32>
    %243 = math.log %242 : vector<8x1xf32>
    %244 = vector.broadcast %243 : vector<8x1xf32> to vector<8x4xf32>
    %245 = arith.subf %239, %244 : vector<8x4xf32>
    %c0_81 = arith.constant 0 : index
    %c0_82 = arith.constant 0 : index
    %246 = vector.load %arg5[%c0_81, %c0_82] : memref<8x4xf32, #tpu.memory_space<vmem>>, vector<8x4xf32>
    tpu.vector_store %arg5[%c0_81, %c0_82], %245 {strides = array<i32>} : memref<8x4xf32, #tpu.memory_space<vmem>>, vector<8x4xf32>,
    %247 = tpu.iota {dimensions = array<i32: 1>} : vector<8x4xi32>
    %248 = vector.broadcast %17 : vector<8x1xi32> to vector<8x4xi32>
    %249 = arith.cmpi eq, %247, %248 : vector<8x4xi32>
    %250 = arith.extui %249 : vector<8x4xi1> to vector<8x4xi32>
    %251 = arith.sitofp %250 : vector<8x4xi32> to vector<8x4xf32>
    %252 = arith.mulf %245, %251 : vector<8x4xf32>
    %253 = vector.shape_cast %252 : vector<8x4xf32> to vector<1x8x4xf32>
    %cst_83 = arith.constant dense<0.000000e+00> : vector<1xf32>
    %254 = vector.multi_reduction <add>, %253, %cst_83 [1, 2] : vector<1x8x4xf32> to vector<1xf32>
    %255 = vector.shape_cast %254 : vector<1xf32> to vector<1x1x1xf32>
    %256 = vector.extract %255[0, 0, 0] : f32 from vector<1x1x1xf32>
    %cst_84 = arith.constant 0.000000e+00 : f32
    %257 = arith.subf %cst_84, %256 : f32
    %cst_85 = arith.constant 1.250000e-01 : f32
    %258 = arith.mulf %257, %cst_85 : f32
    %c0_86 = arith.constant 0 : index
    %c0_87 = arith.constant 0 : index
    %259 = memref.load %arg8[%c0_86, %c0_87] : memref<1x1xf32, #tpu.memory_space<smem>>
    memref.store %258, %arg8[%c0_86, %c0_87] : memref<1x1xf32, #tpu.memory_space<smem>>
    return
  }
}

</mosaic_0001>

<bundles_post_ra>
// kernel: efcl_forward.3
= control target key start
LH: loop header
LB: loop body
LE: loop exit
PB: predicated region body
PF: predicated region fallthrough
CT: control target
= control target key end

     0   :  { %14 = vsyncpa [#allocation3], 0  ;;  %v2048_v3 = vmov 0.0|0.0   ;;  %vm2049_vm0 = vmmov 0   ;;  %v2050_v11 = vmov 0.0   ;;  %s2478_s0 = inlined_call_operand.vmem [shape: f32[8,64], index: 0, kind: input, shape index: {}]   ;;  %s2479_s1 = inlined_call_operand.vmem [shape: f32[8,48], index: 1, kind: input, shape index: {}]   ;;  %s2480_s2 = inlined_call_operand.vmem [shape: f32[240,32], index: 2, kind: input, shape index: {}]   ;;  %s2481_s3 = inlined_call_operand.vmem [shape: f32[8,40], index: 3, kind: input, shape index: {}]   ;;  %s2482_s4 = inlined_call_operand.vmem [shape: s32[8,26], index: 4, kind: input, shape index: {}]   ;;  %s2483_s5 = inlined_call_operand.vmem [shape: f32[8,4], index: 5, kind: output, shape index: {0}]   ;;  %s2484_s6 = inlined_call_operand.hbm [shape: f32[1,1], index: 6, kind: output, shape index: {1}]   ;;  %s2485_s7 = inlined_call_operand.hbm [shape: f32[1,1], index: 7, kind: output, shape index: {2}]   ;;  %s2486_s8 = inlined_call_operand.hbm [shape: f32[1,1], index: 8, kind: output, shape index: {3}]  }
   0x1   :  { %v26_v0 = vld [vmem:[%s2480_s2] sm:$0xff]  ;;  %v27_v1 = vld [vmem:[%s2480_s2 + $0x8] sm:$0xff]  ;;  %1893 = vmatprep.subr.bf16.mxu0 %v2048_v3  ;;  %1905 = vmatprep.subr.bf16.mxu1 %v2048_v3  ;;  %v28_v6 = vld [vmem:[%s2480_s2 + $0x10] sm:$0xff] }
   0x2   :  { %v34_v2 = vld [vmem:[%s2480_s2 + $0x40] sm:$0xff]  ;;  %v1894_v4 = vpack.c.bf16 %v27_v1, %v26_v0  ;;  %v35_v5 = vld [vmem:[%s2480_s2 + $0x48] sm:$0xff]  ;;  %v29_v7 = vld [vmem:[%s2480_s2 + $0x18] sm:$0xff]  ;;  %1789 = vmatprep.mubr.msk.f32.mxu1 %vm2049_vm0, %v2050_v11  ;;  %1774 = vmatprep.mubr.msk.f32.mxu0 %vm2049_vm0, %v2050_v11 }
   0x3   :  { %v1906_v8 = vpack.c.bf16 %v35_v5, %v34_v2  ;;  %v36_v9 = vld [vmem:[%s2480_s2 + $0x50] sm:$0xff]  ;;  %v37_v10 = vld [vmem:[%s2480_s2 + $0x58] sm:$0xff]  ;;  %v1897_v12 = vpack.c.bf16 %v29_v7, %v28_v6  ;;  %v30_v14 = vld [vmem:[%s2480_s2 + $0x20] sm:$0xff] }
   0x4   :  { %1895 = vmatpush3.bf16.msra.mxu0 %v1894_v4  ;;  %v1909_v13 = vpack.c.bf16 %v37_v10, %v36_v9  ;;  %v31_v15 = vld [vmem:[%s2480_s2 + $0x28] sm:$0xff]  ;;  %v38_v16 = vld [vmem:[%s2480_s2 + $0x60] sm:$0xff] }
   0x5   :  { %1907 = vmatpush3.bf16.msra.mxu1 %v1906_v8  ;;  %1896 = vmatprep.subr.bf16.mxu0 %v2048_v3  ;;  %v39_v17 = vld [vmem:[%s2480_s2 + $0x68] sm:$0xff] }
   0x6   :  { %1908 = vmatprep.subr.bf16.mxu1 %v2048_v3 }
   0x7   :  { %15 = vsyncpa [#allocation5], 0  ;;  %v1900_v18 = vpack.c.bf16 %v31_v15, %v30_v14  ;;  %v1912_v19 = vpack.c.bf16 %v39_v17, %v38_v16  ;;  %v32_v20 = vld [vmem:[%s2480_s2 + $0x30] sm:$0xff]  ;;  %v33_v21 = vld [vmem:[%s2480_s2 + $0x38] sm:$0xff]  ;;  %vm150_vm1 = vcmask 392192   ;;  %vm70_vm2 = vcmask 523264  }
   0x8   :  { %1898 = vmatpush3.bf16.msra.mxu0 %v1897_v12  ;;  %v1903_v22 = vpack.c.bf16 %v33_v21, %v32_v20  ;;  %v145_v23 = vld [vmem:[%s2479_s1] sm:$0xff]  ;;  %v43_v26 = vld [vmem:[%s2480_s2 + $0x88] sm:$0xff]  ;;  %vm225_vm3 = vcmask 130048   ;;  %v40_v34 = vld [vmem:[%s2480_s2 + $0x70] sm:$0xff]  ;;  %vm495_vm4 = vcmask 64512   ;;  %v642_v54 = vlaneseq  ;;  %s2053_s28 = smov 26  }
   0x9   :  { %1910 = vmatpush3.bf16.msra.mxu1 %v1909_v13  ;;  %1899 = vmatprep.subr.bf16.mxu0 %v2048_v3  ;;  %v65_v24 = vld [vmem:[%s2478_s0] sm:$0xff]  ;;  %v41_v35 = vld [vmem:[%s2480_s2 + $0x78] sm:$0xff]  ;;  %v2051_v57 = vmov 1.0   ;;  %v2052_v8 = vmov 33   ;;  %s2054_s29 = smov 25   ;;  %v2055_v17 = vmov 32  }
   0xa   :  { %1911 = vmatprep.subr.bf16.mxu1 %v2048_v3  ;;  %v42_v25 = vld [vmem:[%s2480_s2 + $0x80] sm:$0xff]  ;;  %v1918_v40 = vpack.c.bf16 %v41_v35, %v40_v34  ;;  %v2226_v55 = vand.u32 127, %v642_v54  ;;  %v645_v56 = vshrl.u32 %v642_v54, 7  ;;  %1975 = vset.pattern.permute.xlu1 %v2052_v8  ;;  %vm1314_vm12 = vcmask 261120   ;;  %s2058_s16 = smov 126   ;;  %s2060_s0 = smov 10  }
   0xb   :  { %v1915_v27 = vpack.c.bf16 %v43_v26, %v42_v25  ;;  %v61_v28 = vld [vmem:[%s2481_s3 + $0x5] sm:$0x1]  ;;  %v1666_v29 = vld [vmem:[%s2481_s3 + $0x1] ss:$0 sm:$0xff]  ;;  %v1664_v33 = vld [vmem:[%s2481_s3] ss:$0 sm:$0xff] }
   0xc   :  { %1901 = vmatpush3.bf16.msra.mxu0 %v1900_v18  ;;  %1944 = vpush %v61_v28  ;;  %vm646_vm5 = vcmp.le.s32.totalorder %v645_v56, %v2226_v55  ;;  %v62_v12 = vld [vmem:[%s2481_s3] sm:$0xff]  ;;  %v2056_v18 = vmov 0   ;;  %vm1572_vm14 = vcmask 48144   ;;  %vm1514_vm15 = vcmask 15360   ;;  %s2061_s18 = smov 2  }
   0xd   :  { %1913 = vmatpush3.bf16.msra.mxu1 %v1912_v19  ;;  %1902 = vmatprep.subr.bf16.mxu0 %v2048_v3 }
   0xe   :  { %1792 = vmatprep.subr.mxu1 %v2050_v11 }
  0x10   :  { %1790 = vmatmul.mubr.msk.f32.vlgmr.msra.gmra.mrb[0].mxu1 %vm150_vm1, %v145_v23  ;;  %1904 = vmatpush3.bf16.msra.mxu0 %v1903_v22  ;;  %vm1583_vm1 = vcmask 31744  }
  0x11   :  { %1914 = vmatprep.subr.bf16.mxu0 %v2048_v3  ;;  %1794 = vmatprep.mubr.msk.f32.mxu1 %vm2049_vm0, %v2050_v11 }
  0x13   :  { %1775 = vmatmul.mubr.msk.f32.vlgmr.msra.gmra.mrb[0].mxu0 %vm70_vm2, %v65_v24  ;;  %vm1506_vm2 = vcmp.eq.s32.totalorder %v2226_v55, 0 }
  0x14   :  { %1801 = vmatprep.mubr.msk.f32.mxu0 %vm2049_vm0, %v2050_v11  ;;  %1916 = vmatpush3.bf16.msra.mxu0 %v1915_v27 }
  0x15   :  { %1811 = vmatprep.subr.mxu0 %v2050_v11 }
  0x3d   :  { %s1945_s27 = spop %1944 }
  0x3e   :  { %v304_v42 = vstv %s1945_s27 }
  0xe3   :  { %v220_v30 = vpop.f32.mrb[0].mxu1 }
  0xe4   :  { %v221_v31 = vadd.f32 %v1666_v29, %v220_v30  ;;  %v1791_v32 = vpop.f32.mrb[1].mxu1 }
  0xe6   :  { %v2197_v36 = vmax.f32 %v221_v31, 0.0  ;;  %v140_v37 = vpop.f32.mrb[0].mxu0 }
  0xe7   :  { %v141_v38 = vadd.f32 %v1664_v33, %v140_v37  ;;  %v1776_v39 = vpop.f32.mrb[1].mxu0 }
  0xe8   :  { %1793 = vmatpush3.xpose.msk.msra.mxu1 %vm225_vm3, %v2197_v36 }
  0xe9   :  { %v2201_v41 = vmax.f32 %v141_v38, 0.0  ;;  %1917 = vmatprep.subr.bf16.mxu1 %v2048_v3 }
  0xeb   :  { %1795 = vmatmul.mubr.msk.f32.vlgmr.msra.gmra.mrb[2].mxu1 %vm225_vm3, %v2201_v41  ;;  %1802 = vmatmul.mubr.msk.f32.vlgmr.msra.gmra.mrb[2].mxu0 %vm225_vm3, %v2201_v41 }
  0xec   :  { %1919 = vmatpush3.bf16.msra.mxu1 %v1918_v40  ;;  %1808 = vmatprep.mubr.msk.f32.mxu1 %vm2049_vm0, %v2050_v11 }
  0xed   :  { %1813 = vmatprep.mubr.msk.f32.mxu0 %vm2049_vm0, %v2050_v11  ;;  %1816 = vmatprep.subr.mxu1 %v2050_v11 }
  0xee   :  { %1812 = vmatpush3.msk.msra.mxu0 %vm646_vm5, %v2051_v57 }
  0xef   :  { %1809 = vmatmul.mubr.msk.f32.vlgmr.msra.gmra.mrb[4].mxu1 %vm225_vm3, %v2197_v36  ;;  %1821 = vmatprep.subr.mxu0 %v2050_v11 }
  0xf0   :  { %1818 = vmatprep.mubr.msk.f32.mxu1 %vm2049_vm0, %v2050_v11  ;;  %1817 = vmatpush3.msk.msra.mxu1 %vm646_vm5, %v2051_v57  ;;  %vm1505_vm5 = vcmp.eq.s32.totalorder %v2226_v55, 1 }
  0xf1   :  { %1826 = vmatprep.subr.mxu1 %v2050_v11 }
 0x1be   :  { %v298_v43 = vpop.f32.mrb[2].mxu1  ;;  %v373_v44 = vpop.f32.mrb[2].mxu0 }
 0x1bf   :  { %v2217_v45 = vmul.f32 %v304_v42, %v298_v43  ;;  %v2219_v46 = vmul.f32 %v373_v44, %v304_v42  ;;  %v1796_v47 = vpop.f32.mrb[3].mxu1  ;;  %v1803_v48 = vpop.f32.mrb[3].mxu0 }
 0x1c1   :  { %378 = vxpose.xlu0.b32.start.end [1/1] (short) (narrow) %v2217_v45, 8  ;;  %v649_v49 = vadd.f32 0.0001, %v2217_v45  ;;  %v508_v34 = vsel %vm495_vm4, %v2217_v45, -inf  ;;  %v511_v35 = vsel %vm225_vm3, %v2219_v46, -inf }
 0x1c2   :  { %v476_v50 = vpop.f32.mrb[4].mxu1 }
 0x1c3   :  { %v2223_v51 = vmul.f32 %v476_v50, %v304_v42  ;;  %v1810_v52 = vpop.f32.mrb[5].mxu1  ;;  %v650_v53 = vsel %vm495_vm4, %v649_v49, -inf  ;;  %v47_v50 = vld [vmem:[%s2480_s2 + $0xa8] sm:$0xff] }
 0x1c4   :  { %651 = vmax.xlane.f32.xlu1 %v650_v53 }
 0x1c5   :  { %v576_v28 = vsel %vm225_vm3, %v2223_v51, -inf }
 0x241   :  { %v2231_v58 = vpop.trf.xlu0 }
 0x242   :  { %v759_v59 = vadd.f32 0.0001, %v2231_v58  ;;  %v573_v37 = vsel %vm495_vm4, %v2231_v58, -inf }
 0x244   :  { %v760_v60 = vsel %vm495_vm4, %v759_v59, -inf }
 0x245   :  { %761 = vmax.xlane.f32.xlu0 %v760_v60  ;;  %v44_v60 = vld [vmem:[%s2480_s2 + $0x90] sm:$0xff] }
 0x251   :  { %v652_v61 = vpop.xlane.xlu1 %651 }
 0x252   :  { %v653_v62 = vsub.f32 %v649_v49, %v652_v61  ;;  %v46_v49 = vld [vmem:[%s2480_s2 + $0xa0] sm:$0xff]  ;;  %v45_v61 = vld [vmem:[%s2480_s2 + $0x98] sm:$0xff] }
 0x253   :  { %v1924_v57 = vpack.c.bf16 %v47_v50, %v46_v49 }
 0x254   :  { %v654_v63 = vmul.f32 1.442695, %v653_v62 }
 0x256   :  { %1980 = vpow2.f32 %v654_v63 }
 0x260   :  { %v1981_v0 = vpop.eup %1980 }
 0x261   :  { %1814 = vmatmul.mubr.msk.f32.vlgmr.msra.gmra.mrb[4].mxu0 %vm495_vm4, %v1981_v0  ;;  %v1921_v0 = vpack.c.bf16 %v45_v61, %v44_v60 }
 0x262   :  { %1822 = vmatpush3.msra.mxu0 %v2197_v36  ;;  %1823 = vmatprep.mubr.msk.f32.mxu0 %vm2049_vm0, %v2050_v11 }
 0x263   :  { %1920 = vmatprep.subr.bf16.mxu0 %v2048_v3 }
 0x2d2   :  { %v762_v1 = vpop.xlane.xlu0 %761 }
 0x2d3   :  { %v763_v2 = vsub.f32 %v759_v59, %v762_v1 }
 0x2d5   :  { %v764_v4 = vmul.f32 1.442695, %v763_v2  ;;  %v49_v2 = vld [vmem:[%s2480_s2 + $0xb8] sm:$0xff] }
 0x2d7   :  { %1982 = vpow2.f32 %v764_v4 }
 0x2e1   :  { %v1983_v5 = vpop.eup %1982 }
 0x2e2   :  { %1819 = vmatmul.mubr.msk.f32.vlgmr.msra.gmra.mrb[6].mxu1 %vm495_vm4, %v1983_v5 }
 0x2e3   :  { %1827 = vmatpush3.msra.mxu1 %v2201_v41  ;;  %1828 = vmatprep.mubr.msk.f32.mxu1 %vm2049_vm0, %v2050_v11 }
 0x2e4   :  { %1923 = vmatprep.subr.bf16.mxu1 %v2048_v3 }
 0x334   :  { %v725_v6 = vpop.f32.mrb[4].mxu0 }
 0x335   :  { %v1815_v7 = vpop.f32.mrb[5].mxu0 }
 0x336   :  { %v51_v7 = vld [vmem:[%s2480_s2 + $0xc8] sm:$0xff] }
 0x3b5   :  { %v835_v9 = vpop.f32.mrb[6].mxu1 }
 0x3b6   :  { %840 = vrot.lane.b32.xlu1 %v835_v9, %s2053_s28  ;;  %v1820_v10 = vpop.f32.mrb[7].mxu1 }
 0x3ba   :  { %730 = vrot.lane.b32.xlu1 %v725_v6, %s2054_s29 }
 0x428   :  { %v841_v13 = vpop.permute.xlu1 %840 }
 0x429   :  { %v843_v14 = vmul.f32 %v841_v13, %v62_v12 }
 0x42b   :  { %846 = vperm.xlu1 %1975, %v843_v14   ;;  %v1687_v14 = vld [vmem:[%s2481_s3 + $0x2] ss:$0 sm:$0xff] }
 0x42c   :  { %v731_v15 = vpop.permute.xlu1 %730 }
 0x42d   :  { %v733_v16 = vmul.f32 %v731_v15, %v62_v12 }
 0x42f   :  { %1976 = vset.pattern.permute.xlu1 %v2055_v17 }
 0x430   :  { %736 = vperm.xlu1 %1976, %v733_v16  }
 0x434   :  { %1977 = vset.pattern.permute.xlu1 %v2056_v18 }
 0x4aa   :  { %v847_v19 = vpop.permute.xlu1 %846 }
 0x4ab   :  { %vm849_vm6 = vcmp.le.f32.partialorder %v835_v9, %v847_v19  ;;  %v52_v19 = vld [vmem:[%s2480_s2 + $0xd0] sm:$0xff] }
 0x4ac   :  { %v850_v20 = vsel %vm849_vm6, 1, %v2056_v18 }
 0x4ad   :  { %v851_v21 = vsel %vm495_vm4, %v850_v20, 0  ;;  %v53_v20 = vld [vmem:[%s2480_s2 + $0xd8] sm:$0xff] }
 0x4ae   :  { %v853_v22 = vshrl.u32 %v851_v21, 16  ;;  %v852_v30 = vand.u32 65535, %v851_v21  ;;  %v1939_v21 = vpack.c.bf16 %v53_v20, %v52_v19 }
 0x4af   :  { %v737_v23 = vpop.permute.xlu1 %736 }
 0x4b0   :  { %vm739_vm7 = vcmp.le.f32.partialorder %v725_v6, %v737_v23  ;;  %v855_v24 = vcvt.s32.f32 %v853_v22  ;;  %v854_v31 = vcvt.s32.f32 %v852_v30  ;;  %v54_v22 = vld [vmem:[%s2480_s2 + $0xe0] sm:$0xff]  ;;  %v55_v23 = vld [vmem:[%s2480_s2 + $0xe8] sm:$0xff] }
 0x4b1   :  { %v740_v25 = vsel %vm739_vm7, 1, %v2056_v18 }
 0x4b2   :  { %v741_v26 = vsel %vm495_vm4, %v740_v25, 0  ;;  %858 = vadd.xlane.f32.xlu1 %v855_v24  ;;  %v1942_v24 = vpack.c.bf16 %v55_v23, %v54_v22  ;;  %v63_v25 = vld [vmem:[%s2482_s4] sm:$0xff] }
 0x4b3   :  { %v743_v27 = vshrl.u32 %v741_v26, 16  ;;  %v742_v32 = vand.u32 65535, %v741_v26  ;;  %v2057_v26 = vmov 1  }
 0x4b4   :  { %1979 = vset.pattern.permute.xlu0 %v2057_v26 }
 0x4b5   :  { %v745_v29 = vcvt.s32.f32 %v743_v27  ;;  %v744_v33 = vcvt.s32.f32 %v742_v32 }
 0x4b6   :  { %577 = vmax.xlane.f32.xlu1 %v576_v28 }
 0x4b7   :  { %748 = vadd.xlane.f32.xlu0 %v745_v29 }
 0x4bb   :  { %856 = vadd.xlane.f32.xlu0 %v854_v31 }
 0x4bf   :  { %746 = vadd.xlane.f32.xlu0 %v744_v33 }
 0x4c3   :  { %509 = vmax.xlane.f32.xlu0 %v508_v34  ;;  %v1688_v34 = vld [vmem:[%s2481_s3 + $0x3] ss:$0 sm:$0xff] }
 0x4c7   :  { %512 = vmax.xlane.f32.xlu0 %v511_v35  ;;  %482 = vperm.xlu1 %1977, %v63_v25  }
 0x4cb   :  { %574 = vmax.xlane.f32.xlu0 %v573_v37  ;;  %1978 = vset.pattern.permute.xlu1 %v2057_v26 }
 0x53f   :  { %v859_v38 = vpop.xlane.xlu1 %858 }
 0x540   :  { %v861_v40 = vcvt.f32.s32 %v859_v38 }
 0x542   :  { %v862_v43 = vshll.u32 %v861_v40, 16  ;;  %v1672_v40 = vld [vmem:[%s2482_s4] ss:$0 sm:$0xff] }
 0x543   :  { %v578_v35 = vpop.xlane.xlu1 %577 }
 0x544   :  { %v749_v39 = vpop.xlane.xlu0 %748 }
 0x545   :  { %v751_v44 = vcvt.f32.s32 %v749_v39 }
 0x547   :  { %v752_v53 = vshll.u32 %v751_v44, 16 }
 0x548   :  { %v857_v42 = vpop.xlane.xlu0 %856 }
 0x549   :  { %v860_v47 = vcvt.f32.s32 %v857_v42  ;;  %v483_v42 = vpop.permute.xlu1 %482 }
 0x54a   :  { %vm488_vm13 = vcmp.eq.s32.totalorder %v483_v42, %v1672_v40 }
 0x54b   :  { %v863_v48 = vadd.s32 %v862_v43, %v860_v47  ;;  %v2347_v43 = vsel %vm488_vm13, 1.0, %v2050_v11 }
 0x54c   :  { %v747_v52 = vpop.xlane.xlu0 %746  ;;  %492 = vrot.lane.b32.xlu1 %v2347_v43, %s2058_s16 }
 0x54d   :  { %vm864_vm8 = vcmp.lt.s32.totalorder %v863_v48, 7  ;;  %v750_v54 = vcvt.f32.s32 %v747_v52 }
 0x54e   :  { %v865_v56 = vsel %vm864_vm8, %v863_v48, 7 }
 0x54f   :  { %vm866_vm9 = vcmp.eq.s32.totalorder %v2226_v55, %v865_v56  ;;  %v753_v59 = vadd.s32 %v752_v53, %v750_v54 }
 0x550   :  { %v1680_v62 = vsel %vm866_vm9, 1.0, %v2050_v11  ;;  %1596 = vperm.xlu1 %1978, %v63_v25   ;;  %v510_v44 = vpop.xlane.xlu0 %509 }
 0x551   :  { %vm754_vm10 = vcmp.lt.s32.totalorder %v753_v59, 7  ;;  %1829 = vmatmul.mubr.msk.f32.vlgmr.msra.gmra.mrb[8].mxu1 %vm495_vm4, %v1680_v62 }
 0x552   :  { %v755_v63 = vsel %vm754_vm10, %v753_v59, 7  ;;  %1925 = vmatpush3.bf16.msra.mxu1 %v1924_v57  ;;  %1842 = vmatprep.mubr.msk.f32.mxu1 %vm2049_vm0, %v2050_v11 }
 0x553   :  { %vm756_vm11 = vcmp.eq.s32.totalorder %v2226_v55, %v755_v63  ;;  %1929 = vmatprep.subr.bf16.mxu1 %v2048_v3 }
 0x554   :  { %v1677_v1 = vsel %vm756_vm11, 1.0, %v2050_v11  ;;  %v513_v47 = vpop.xlane.xlu0 %512 }
 0x555   :  { %1824 = vmatmul.mubr.msk.f32.vlgmr.msra.gmra.mrb[6].mxu0 %vm495_vm4, %v1677_v1  ;;  %1843 = vmatmul.mubr.msk.f32.vlgmr.msra.gmra.mrb[10].mxu1 %vm225_vm3, %v2197_v36  ;;  %v48_v36 = vld [vmem:[%s2480_s2 + $0xb0] sm:$0xff]  ;;  %v514_v48 = vmax.f32 %v510_v44, %v513_v47  ;;  %v2373_v1 = vld [vmem:[%s2481_s3 + $0x4] ss:$0 sm:$0xff]  ;;  %s2059_s3 = smov 118  }
 0x556   :  { %1922 = vmatpush3.bf16.msra.mxu0 %v1921_v0  ;;  %1835 = vmatprep.mubr.msk.f32.mxu0 %vm2049_vm0, %v2050_v11  ;;  %v1933_v6 = vpack.c.bf16 %v49_v2, %v48_v36 }
 0x557   :  { %1931 = vmatpush3.bf16.msra.mxu1 %v1921_v0  ;;  %1856 = vmatprep.mubr.msk.f32.mxu1 %vm2049_vm0, %v2050_v11  ;;  %v2352_v49 = vsub.f32 %v2217_v45, %v514_v48  ;;  %v2356_v53 = vsub.f32 %v2219_v46, %v514_v48 }
 0x558   :  { %1926 = vmatprep.subr.bf16.mxu0 %v2048_v3  ;;  %1938 = vmatprep.subr.bf16.mxu1 %v2048_v3  ;;  %v575_v50 = vpop.xlane.xlu0 %574 }
 0x559   :  { %1836 = vmatmul.mubr.msk.f32.vlgmr.msra.gmra.mrb[8].mxu0 %vm225_vm3, %v2201_v41  ;;  %v50_v41 = vld [vmem:[%s2480_s2 + $0xc0] sm:$0xff]  ;;  %v516_v52 = vmul.f32 1.442695, %v2352_v49  ;;  %v579_v54 = vmax.f32 %v575_v50, %v578_v35  ;;  %v522_v60 = vmul.f32 1.442695, %v2356_v53  ;;  %s2014_s2 = scalar_lea.hbm %s2485_s7, 16 }
 0x55a   :  { %1928 = vmatpush3.bf16.msra.mxu0 %v1924_v57  ;;  %1849 = vmatprep.mubr.msk.f32.mxu0 %vm2049_vm0, %v2050_v11  ;;  %v1936_v13 = vpack.c.bf16 %v51_v7, %v50_v41  ;;  %p2015_p0 = scmp.ne.s32.totalorder %s2485_s7, %s2014_s2  ;;  %p2018_p1 = scmp.lt.u32.totalorder %s2014_s2, %s2485_s7 }
 0x55b   :  { %1932 = vmatprep.subr.bf16.mxu0 %v2048_v3  ;;  %1984 = vpow2.f32 %v516_v52  ;;  %v2361_v61 = vsub.f32 %v2231_v58, %v579_v54  ;;  %v2368_v0 = vsub.f32 %v2223_v51, %v579_v54 }
 0x55c   :  { %1986 = vpow2.f32 %v522_v60  ;;  %p2020_p2 = pnand %p2018_p1, %p2015_p0 }
 0x55d   :  { %v581_v46 = vmul.f32 1.442695, %v2361_v61 }
 0x55f   :  { %1988 = vpow2.f32 %v581_v46 }
 0x624   :  { %v1011_v4 = vpop.f32.mrb[8].mxu1 }
 0x625   :  { %v1830_v5 = vpop.f32.mrb[9].mxu1  ;;  %1857 = vmatmul.mubr.msk.f32.vlgmr.msra.gmra.mrb[12].mxu1 %vm225_vm3, %v1011_v4  ;;  %v587_v4 = vmul.f32 1.442695, %v2368_v0 }
 0x626   :  { %1884 = vmatprep.mubr.msk.f32.mxu1 %vm2049_vm0, %v2050_v11  ;;  %1940 = vmatpush3.bf16.msra.mxu1 %v1939_v21  ;;  %v493_v21 = vpop.permute.xlu1 %492 }
 0x627   :  { %1941 = vmatprep.subr.bf16.mxu1 %v2048_v3  ;;  %1990 = vpow2.f32 %v587_v4  ;;  %v496_v22 = vsel %vm495_vm4, %v493_v21, 0.0 }
 0x628   :  { %v938_v8 = vpop.f32.mrb[6].mxu0  ;;  %v1151_v9 = vpop.f32.mrb[10].mxu1 }
 0x629   :  { %v1825_v10 = vpop.f32.mrb[7].mxu0  ;;  %v1844_v12 = vpop.f32.mrb[11].mxu1  ;;  %1850 = vmatmul.mubr.msk.f32.vlgmr.msra.gmra.mrb[10].mxu0 %vm225_vm3, %v938_v8 }
 0x62a   :  { %1934 = vmatpush3.bf16.msra.mxu0 %v1933_v6  ;;  %1867 = vmatprep.mubr.msk.f32.mxu0 %vm2049_vm0, %v2050_v11  ;;  %v1985_v6 = vpop.eup %1984  ;;  %v1597_v35 = vpop.permute.xlu1 %1596 }
 0x62b   :  { %1935 = vmatprep.subr.bf16.mxu0 %v2048_v3  ;;  %1943 = vmatpush3.bf16.msra.mxu1 %v1942_v24  ;;  %v518_v41 = vsel %vm495_vm4, %v1985_v6, 0.0  ;;  %v1987_v7 = vpop.eup %1986 }
 0x62c   :  { %v1081_v15 = vpop.f32.mrb[8].mxu0  ;;  %v524_v8 = vsel %vm225_vm3, %v1987_v7, 0.0 }
 0x62d   :  { %v1228_v16 = vadd.f32 %v1151_v9, %v1081_v15  ;;  %v1837_v17 = vpop.f32.mrb[9].mxu0 }
 0x62e   :  { %1937 = vmatpush3.bf16.msra.mxu0 %v1936_v13 }
 0x62f   :  { %v1307_v18 = vadd.f32 %v1687_v14, %v1228_v16 }
 0x631   :  { %1868 = vmatmul.mubr.msk.f32.vlgmr.msra.gmra.mrb[12].mxu0 %vm1314_vm12, %v1307_v18 }
 0x632   :  { %1870 = vmatprep.mubr.msk.f32.mxu0 %vm2049_vm0, %v2050_v11 }
 0x6f8   :  { %v1298_v27 = vpop.f32.mrb[12].mxu1 }
 0x6f9   :  { %v1299_v3 = vadd.f32 %v1298_v27, %v1151_v9  ;;  %v1858_v28 = vpop.f32.mrb[13].mxu1  ;;  %v1989_v9 = vpop.eup %1988 }
 0x6fa   :  { %v583_v10 = vsel %vm495_vm4, %v1989_v9, 0.0  ;;  %v1991_v12 = vpop.eup %1990 }
 0x6fb   :  { %v1308_v29 = vadd.f32 %v1687_v14, %v1299_v3  ;;  %v589_v13 = vsel %vm225_vm3, %v1991_v12, 0.0 }
 0x6fc   :  { %v1224_v30 = vpop.f32.mrb[10].mxu0 }
 0x6fd   :  { %v1302_v31 = vadd.f32 %v1224_v30, %v1081_v15  ;;  %v1851_v32 = vpop.f32.mrb[11].mxu0  ;;  %1871 = vmatmul.mubr.msk.f32.gmra.mrb[14].mxu0 %vm1314_vm12, %v1308_v29 }
 0x6fe   :  { %1873 = vmatprep.mubr.msk.f32.mxu0 %vm2049_vm0, %v2050_v11 }
 0x6ff   :  { %v1309_v33 = vadd.f32 %v1687_v14, %v1302_v31 }
 0x701   :  { %1874 = vmatmul.mubr.msk.f32.gmra.mrb[16].mxu0 %vm1314_vm12, %v1309_v33 }
 0x704   :  { %v1390_v37 = vpop.f32.mrb[12].mxu0 }
 0x705   :  { %v1391_v38 = vadd.f32 %v1688_v34, %v1390_v37  ;;  %v1869_v39 = vpop.f32.mrb[13].mxu0 }
 0x707   :  { %1885 = vmatmul.mubr.msk.f32.vlgmr.msra.gmra.mrb[14].mxu1 %vm1314_vm12, %v1391_v38 }
 0x708   :  { %1887 = vmatprep.mubr.msk.f32.mxu1 %vm2049_vm0, %v2050_v11 }
 0x7d0   :  { %v1395_v56 = vpop.f32.mrb[14].mxu0 }
 0x7d1   :  { %v1396_v57 = vadd.f32 %v1688_v34, %v1395_v56  ;;  %v1872_v59 = vpop.f32.mrb[15].mxu0 }
 0x7d3   :  { %1888 = vmatmul.mubr.msk.f32.gmra.mrb[16].mxu1 %vm1314_vm12, %v1396_v57 }
 0x7d4   :  { %v1400_v45 = vpop.f32.mrb[16].mxu0  ;;  %1890 = vmatprep.mubr.msk.f32.mxu1 %vm2049_vm0, %v2050_v11  ;;  %vm1598_vm0 = vcmp.eq.s32.totalorder %v2226_v55, %v1597_v35  ;;  %v1696_v35 = vsel %vm1505_vm5, 1.0, %v2050_v11 }
 0x7d5   :  { %v1401_v62 = vadd.f32 %v1688_v34, %v1400_v45  ;;  %v1875_v63 = vpop.f32.mrb[17].mxu0  ;;  %v1699_v38 = vsel %vm1598_vm0, 1.0, %v2050_v11 }
 0x7d7   :  { %1891 = vmatmul.mubr.msk.f32.gmra.mrb[18].mxu1 %vm1314_vm12, %v1401_v62 }
 0x7da   :  { %v1483_v58 = vpop.f32.mrb[14].mxu1 }
 0x7db   :  { %v2376_v36 = vadd.f32 %v2373_v1, %v1483_v58  ;;  %v1886_v2 = vpop.f32.mrb[15].mxu1 }
 0x7dd   :  { %v1573_v5 = vsel %vm1572_vm14, %v2376_v36, -inf  ;;  %v1515_v51 = vsel %vm1514_vm15, %v2376_v36, -inf }
 0x7de   :  { %1574 = vmax.xlane.f32.xlu0 %v1573_v5  ;;  %1516 = vmax.xlane.f32.xlu1 %v1515_v51 }
 0x7e2   :  { %519 = vadd.xlane.f32.xlu0 %v518_v41 }
 0x7e6   :  { %525 = vadd.xlane.f32.xlu0 %v524_v8 }
 0x7ea   :  { %584 = vadd.xlane.f32.xlu0 %v583_v10 }
 0x7ee   :  { %590 = vadd.xlane.f32.xlu0 %v589_v13 }
 0x804   :  { %499 = vrot.lane.b32.xlu0 %v2347_v43, %s2059_s3 }
 0x86b   :  { %v1575_v14 = vpop.xlane.xlu0 %1574  ;;  %v1517_v50 = vpop.xlane.xlu1 %1516 }
 0x86c   :  { %v2389_v15 = vsub.f32 %v2376_v36, %v1575_v14  ;;  %v2407_v54 = vsub.f32 %v2376_v36, %v1517_v50 }
 0x86e   :  { %v1577_v16 = vmul.f32 1.442695, %v2389_v15  ;;  %v1527_v56 = vmul.f32 1.442695, %v2407_v54 }
 0x86f   :  { %v520_v18 = vpop.xlane.xlu0 %519 }
 0x870   :  { %1992 = vpow2.f32 %v1577_v16 }
 0x873   :  { %v526_v19 = vpop.xlane.xlu0 %525 }
 0x874   :  { %v527_v20 = vadd.f32 %v526_v19, %v520_v18 }
 0x876   :  { %1994 = vlog2.f32 %v527_v20 }
 0x877   :  { %v585_v23 = vpop.xlane.xlu0 %584 }
 0x87a   :  { %v1993_v17 = vpop.eup %1992 }
 0x87b   :  { %1580 = vrot.lane.b32.xlu1 %v1993_v17, %s2058_s16  ;;  %v591_v24 = vpop.xlane.xlu0 %590 }
 0x87c   :  { %v592_v39 = vadd.f32 %v591_v24, %v585_v23 }
 0x87e   :  { %1996 = vlog2.f32 %v592_v39 }
 0x87f   :  { %v500_v30 = vpop.permute.xlu0 %499  ;;  %1998 = vpow2.f32 %v1527_v56 }
 0x880   :  { %v1995_v26 = vpop.eup %1994  ;;  %v502_v33 = vsel %vm225_vm3, %v500_v30, 0.0 }
 0x881   :  { %v529_v29 = vmul.f32 0.6931472, %v1995_v26 }
 0x883   :  { %v550_v34 = vsub.f32 %v2356_v53, %v529_v29  ;;  %v530_v37 = vsub.f32 %v2352_v49, %v529_v29 }
 0x888   :  { %v1997_v44 = vpop.eup %1996 }
 0x889   :  { %v594_v47 = vmul.f32 0.6931472, %v1997_v44  ;;  %v1999_v60 = vpop.eup %1998 }
 0x88a   :  { %v1533_v46 = vsel %vm1514_vm15, %v1999_v60, 0.0 }
 0x88b   :  { %v595_v48 = vsub.f32 %v2361_v61, %v594_v47  ;;  %v615_v53 = vsub.f32 %v2368_v0, %v594_v47 }
 0x89f   :  { %497 = vadd.xlane.f32.xlu1 %v496_v22 }
 0x8a6   :  { %v1488_v25 = vpop.f32.mrb[16].mxu1 }
 0x8a7   :  { %v1489_v27 = vadd.f32 %v2373_v1, %v1488_v25  ;;  %v1889_v3 = vpop.f32.mrb[17].mxu1 }
 0x8a9   :  { %v1518_v28 = vsel %vm1514_vm15, %v1489_v27, -inf }
 0x8aa   :  { %1519 = vmax.xlane.f32.xlu0 %v1518_v28  ;;  %v1493_v31 = vpop.f32.mrb[18].mxu1 }
 0x8ab   :  { %v1892_v32 = vpop.f32.mrb[19].mxu1  ;;  %v1494_v40 = vadd.f32 %v2373_v1, %v1493_v31 }
 0x8ad   :  { %v1521_v42 = vsel %vm1514_vm15, %v1494_v40, -inf }
 0x8ae   :  { %503 = vadd.xlane.f32.xlu0 %v502_v33  ;;  %v1697_v33 = vsel %vm1506_vm2, 1.0, %v2050_v11 }
 0x8b0   :  { %552 = vrot.lane.b32.xlu1 %v550_v34, %s2060_s0 }
 0x8c4   :  { %532 = vrot.lane.b32.xlu0 %v530_v37, %s2061_s18 }
 0x8c8   :  { %1602 = vrot.lane.b32.xlu0 %v1699_v38, %s2061_s18 }
 0x8d4   :  { %1522 = vmax.xlane.f32.xlu1 %v1521_v42 }
 0x8e5   :  { %597 = vrot.lane.b32.xlu1 %v595_v48, %s2061_s18 }
 0x8ed   :  { %v1581_v52 = vpop.permute.xlu1 %1580 }
 0x8ee   :  { %v1584_v49 = vsel %vm1583_vm1, %v1581_v52, 0.0 }
 0x909   :  { %1585 = vadd.xlane.f32.xlu1 %v1584_v49 }
 0x91a   :  { %617 = vrot.lane.b32.xlu1 %v615_v53, %s2060_s0 }
 0x92c   :  { %v498_v45 = vpop.xlane.xlu1 %497 }
 0x930   :  { %v553_v2 = vpop.permute.xlu1 %552 }
 0x937   :  { %v1520_v57 = vpop.xlane.xlu0 %1519 }
 0x938   :  { %v2410_v59 = vsub.f32 %v1489_v27, %v1520_v57 }
 0x93a   :  { %v1529_v61 = vmul.f32 1.442695, %v2410_v59 }
 0x93b   :  { %v504_v62 = vpop.xlane.xlu0 %503 }
 0x93c   :  { %2000 = vpow2.f32 %v1529_v61  ;;  %v505_v63 = vadd.f32 %v504_v62, %v498_v45 }
 0x93e   :  { %2002 = vrcp.f32 %v505_v63  ;;  %1534 = vadd.xlane.f32.xlu1 %v1533_v46 }
 0x93f   :  { %v533_v10 = vpop.permute.xlu0 %532 }
 0x943   :  { %v1603_v19 = vpop.permute.xlu0 %1602 }
 0x946   :  { %v2001_v0 = vpop.eup %2000 }
 0x947   :  { %v1536_v1 = vsel %vm1514_vm15, %v2001_v0, 0.0 }
 0x948   :  { %v2003_v58 = vpop.eup %2002  ;;  %1537 = vadd.xlane.f32.xlu0 %v1536_v1 }
 0x949   :  { %v507_v36 = vmul.f32 %v2003_v58, %v2347_v43 }
 0x94b   :  { %v555_v4 = vmul.f32 %v553_v2, %v507_v36  ;;  %v535_v12 = vmul.f32 %v533_v10, %v507_v36 }
 0x94f   :  { %557 = vrot.lane.b32.xlu1 %v555_v4, %s2059_s3 }
 0x961   :  { %v1523_v5 = vpop.xlane.xlu1 %1522 }
 0x962   :  { %v1526_v51 = vsub.f32 %v1494_v40, %v1523_v5 }
 0x964   :  { %v1531_v6 = vmul.f32 1.442695, %v1526_v51 }
 0x965   :  { %v598_v41 = vpop.permute.xlu1 %597 }
 0x966   :  { %2004 = vpow2.f32 %v1531_v6  ;;  %v600_v7 = vmul.f32 %v598_v41, %v507_v36 }
 0x968   :  { %602 = vrot.lane.b32.xlu1 %v600_v7, %s2058_s16 }
 0x970   :  { %v2005_v8 = vpop.eup %2004 }
 0x971   :  { %v1539_v9 = vsel %vm1514_vm15, %v2005_v8, 0.0 }
 0x972   :  { %1540 = vadd.xlane.f32.xlu0 %v1539_v9 }
 0x988   :  { %537 = vrot.lane.b32.xlu0 %v535_v12, %s2058_s16 }
 0x996   :  { %v1586_v43 = vpop.xlane.xlu1 %1585 }
 0x997   :  { %2006 = vlog2.f32 %v1586_v43 }
 0x99a   :  { %v618_v13 = vpop.permute.xlu1 %617 }
 0x99b   :  { %v620_v14 = vmul.f32 %v618_v13, %v507_v36 }
 0x99d   :  { %622 = vrot.lane.b32.xlu1 %v620_v14, %s2059_s3 }
 0x9a1   :  { %v2007_v16 = vpop.eup %2006 }
 0x9a2   :  { %v1588_v17 = vmul.f32 0.6931472, %v2007_v16 }
 0x9a4   :  { %v1589_v18 = vsub.f32 %v2389_v15, %v1588_v17 }
 0x9a6   :  { %v1605_v20 = vmul.f32 %v1603_v19, %v1589_v18 }
 0x9a8   :  { %1607 = vrot.lane.b32.xlu0 %v1605_v20, %s2058_s16 }
 0x9cb   :  { %v1535_v21 = vpop.xlane.xlu1 %1534 }
 0x9cf   :  { %v558_v22 = vpop.permute.xlu1 %557 }
 0x9d0   :  { %v560_v23 = vsel %vm225_vm3, %v558_v22, 0.0 }
 0x9d1   :  { %561 = vadd.xlane.f32.xlu0 %v560_v23 }
 0x9d5   :  { %v1538_v26 = vpop.xlane.xlu0 %1537 }
 0x9d6   :  { %2008 = vlog2.f32 %v1538_v26 }
 0x9d7   :  { %2010 = vlog2.f32 %v1535_v21 }
 0x9da   :  { %v603_v24 = vpop.permute.xlu1 %602 }
 0x9db   :  { %v605_v25 = vsel %vm495_vm4, %v603_v24, 0.0 }
 0x9dc   :  { %606 = vadd.xlane.f32.xlu0 %v605_v25 }
 0x9e0   :  { %v2009_v27 = vpop.eup %2008 }
 0x9e1   :  { %v2011_v28 = vpop.eup %2010  ;;  %v1545_v15 = vmul.f32 0.6931472, %v2009_v27 }
 0x9e2   :  { %v1543_v29 = vmul.f32 0.6931472, %v2011_v28 }
 0x9e3   :  { %v1549_v32 = vsub.f32 %v2410_v59, %v1545_v15 }
 0x9e4   :  { %v1548_v34 = vsub.f32 %v2407_v54, %v1543_v29 }
 0x9e5   :  { %v1552_v37 = vmul.f32 %v1697_v33, %v1549_v32 }
 0x9e6   :  { %v1551_v40 = vmul.f32 %v1696_v35, %v1548_v34 }
 0x9e7   :  { %v1555_v44 = vsel %vm1514_vm15, %v1552_v37, 0.0 }
 0x9e8   :  { %v1554_v50 = vsel %vm1514_vm15, %v1551_v40, 0.0 }
 0x9e9   :  { %v1556_v55 = vadd.f32 %v1555_v44, %v1554_v50 }
 0x9ff   :  { %v1541_v3 = vpop.xlane.xlu0 %1540 }
 0xa00   :  { %2012 = vlog2.f32 %v1541_v3 }
 0xa03   :  { %v538_v30 = vpop.permute.xlu0 %537 }
 0xa04   :  { %v540_v31 = vsel %vm495_vm4, %v538_v30, 0.0 }
 0xa05   :  { %541 = vadd.xlane.f32.xlu1 %v540_v31 }
 0xa0a   :  { %v2013_v38 = vpop.eup %2012 }
 0xa0b   :  { %v1547_v39 = vmul.f32 0.6931472, %v2013_v38 }
 0xa0d   :  { %v1550_v42 = vsub.f32 %v1526_v51, %v1547_v39 }
 0xa0f   :  { %v623_v47 = vpop.permute.xlu1 %622  ;;  %v1553_v48 = vmul.f32 %v1697_v33, %v1550_v42 }
 0xa10   :  { %v625_v52 = vsel %vm225_vm3, %v623_v47, 0.0 }
 0xa11   :  { %626 = vadd.xlane.f32.xlu0 %v625_v52  ;;  %v1557_v49 = vsel %vm1514_vm15, %v1553_v48, 0.0 }
 0xa12   :  { %v1558_v53 = vadd.f32 %v1557_v49, %v1556_v55 }
 0xa14   :  { %1559 = vadd.xlane.f32.xlu1 %v1558_v53 }
 0xa1a   :  { %v1608_v11 = vpop.permute.xlu0 %1607 }
 0xa1b   :  { %v1610_v54 = vsel %vm1583_vm1, %v1608_v11, 0.0 }
 0xa1c   :  { %1611 = vadd.xlane.f32.xlu0 %v1610_v54 }
 0xa25   :  { %1591 = vrot.lane.b32.xlu1 %v1589_v18, %s2058_s16 }
 0xa5e   :  { %v562_v56 = vpop.xlane.xlu0 %561 }
 0xa5f   :  { %v563_v59 = vrot.slane %v562_v56, 4 }
 0xa61   :  { %v564_v61 = vadd.f32 %v563_v59, %v562_v56 }
 0xa63   :  { %v565_v62 = vrot.slane %v564_v61, 2 }
 0xa65   :  { %v566_v58 = vadd.f32 %v565_v62, %v564_v61 }
 0xa67   :  { %v567_v5 = vrot.slane %v566_v58, 1 }
 0xa69   :  { %v607_v57 = vpop.xlane.xlu0 %606  ;;  %v568_v8 = vadd.f32 %v567_v5, %v566_v58 }
 0xa6a   :  { %v608_v60 = vrot.slane %v607_v57, 4 }
 0xa6c   :  { %v609_v45 = vadd.f32 %v608_v60, %v607_v57 }
 0xa6e   :  { %v610_v46 = vrot.slane %v609_v45, 2 }
 0xa70   :  { %v611_v2 = vadd.f32 %v610_v46, %v609_v45 }
 0xa72   :  { %v612_v6 = vrot.slane %v611_v2, 1 }
 0xa74   :  { %v613_v10 = vadd.f32 %v612_v6, %v611_v2 }
 0xa92   :  { %v542_v63 = vpop.xlane.xlu1 %541 }
 0xa93   :  { %v543_v0 = vrot.slane %v542_v63, 4 }
 0xa95   :  { %v544_v1 = vadd.f32 %v543_v0, %v542_v63 }
 0xa97   :  { %v545_v36 = vrot.slane %v544_v1, 2 }
 0xa99   :  { %v546_v4 = vadd.f32 %v545_v36, %v544_v1 }
 0xa9b   :  { %v547_v51 = vrot.slane %v546_v4, 1 }
 0xa9d   :  { %v548_v41 = vadd.f32 %v547_v51, %v546_v4 }
 0xa9e   :  { %v627_v7 = vpop.xlane.xlu0 %626 }
 0xa9f   :  { %v628_v9 = vrot.slane %v627_v7, 4  ;;  %1946 = vpush %v548_v41 }
 0xaa0   :  { %1948 = vpush %v568_v8 }
 0xaa1   :  { %v629_v12 = vadd.f32 %v628_v9, %v627_v7  ;;  %1950 = vpush %v613_v10  ;;  %v1560_v43 = vpop.xlane.xlu1 %1559 }
 0xaa2   :  { %v1561_v13 = vrot.slane %v1560_v43, 4 }
 0xaa3   :  { %v630_v14 = vrot.slane %v629_v12, 2 }
 0xaa4   :  { %v1562_v16 = vadd.f32 %v1561_v13, %v1560_v43 }
 0xaa5   :  { %v1592_v17 = vpop.permute.xlu1 %1591  ;;  %v631_v18 = vadd.f32 %v630_v14, %v629_v12 }
 0xaa6   :  { %v1563_v19 = vrot.slane %v1562_v16, 2  ;;  %1594 = vst.msk [vmem:[%s2483_s5] sm:$0xff] %vm1583_vm1, %v1592_v17 }
 0xaa7   :  { %v632_v20 = vrot.slane %v631_v18, 1 }
 0xaa8   :  { %v1564_v21 = vadd.f32 %v1563_v19, %v1562_v16 }
 0xaa9   :  { %v1612_v22 = vpop.xlane.xlu0 %1611  ;;  %v633_v23 = vadd.f32 %v632_v20, %v631_v18 }
 0xaaa   :  { %v1613_v24 = vrot.slane %v1612_v22, 4  ;;  %v1565_v25 = vrot.slane %v1564_v21, 1 }
 0xaab   :  { %1952 = vpush %v633_v23 }
 0xaac   :  { %v1614_v26 = vadd.f32 %v1613_v24, %v1612_v22  ;;  %v1566_v27 = vadd.f32 %v1565_v25, %v1564_v21 }
 0xaae   :  { %v1615_v3 = vrot.slane %v1614_v26, 2  ;;  %1954 = vpush %v1566_v27 }
 0xab0   :  { %v1616_v28 = vadd.f32 %v1615_v3, %v1614_v26 }
 0xab2   :  { %v1617_v15 = vrot.slane %v1616_v28, 1 }
 0xab4   :  { %v1618_v29 = vadd.f32 %v1617_v15, %v1616_v28 }
 0xab6   :  { %1956 = vpush %v1618_v29 }
 0xad0   :  { %s1947_s21 = spop %1946 }
 0xad1   :  { %s1949_s22 = spop %1948 }
 0xad2   :  { %s570_s23 = sadd.f32 %s1949_s22, %s1947_s21  ;;  %s1951_s24 = spop %1950 }
 0xad4   :  { %s571_s5 = ssub.f32 0.0, %s570_s23 }
 0xad6   :  { %s572_s29 = smul.f32 0.125, %s571_s5 }
 0xadc   :  { %s1953_s25 = spop %1952 }
 0xadd   :  { %s635_s26 = sadd.f32 %s1953_s25, %s1951_s24 }
 0xadf   :  { %s636_s27 = ssub.f32 0.0, %s635_s26  ;;  %s1955_s28 = spop %1954 }
 0xae0   :  { %s1568_s30 = ssub.f32 0.0, %s1955_s28 }
 0xae1   :  { %s637_s9 = smul.f32 0.125, %s636_s27 }
 0xae2   :  { %s1569_s10 = smul.f32 0.041666668, %s1568_s30 }
 0xae3   :  { %s638_s11 = sadd.f32 %s637_s9, %s572_s29 }
 0xae4   :  { %1571 = sst [smem:[#allocation4]] %s1569_s10 }
 0xae5   :  { %2023 = shalt.err (!%p2020_p2)
}
 0xae6   :  { %s2062_s4 = smov [#allocation4]   ;;  %s639_s0 = smul.f32 0.5, %s638_s11 }
 0xae7   :  { %1641 = dma.smem_to_hbm %s2062_s4, 16, %s2485_s7, [#allocation5]  }
 0xae8   :  { %s1957_s18 = spop %1956  ;;  %641 = sst [smem:[#allocation2]] %s639_s0 }
 0xae9   :  { %s1620_s19 = ssub.f32 0.0, %s1957_s18  ;;  %s2024_s23 = scalar_lea.hbm %s2484_s6, 16 }
 0xaea   :  { %p2025_p3 = scmp.ne.s32.totalorder %s2484_s6, %s2024_s23  ;;  %p2028_p4 = scmp.lt.u32.totalorder %s2024_s23, %s2484_s6 }
 0xaeb   :  { %s1621_s20 = smul.f32 0.125, %s1620_s19 }
 0xaec   :  { %p2030_p5 = pnand %p2028_p4, %p2025_p3 }
 0xaee   :  { %2033 = shalt.err (!%p2030_p5)
}
 0xaef   :  { %s2063_s7 = smov [#allocation2]   ;;  %1623 = sst [smem:[#allocation6]] %s1621_s20 }
 0xaf0   :  { %1633 = dma.smem_to_hbm %s2063_s7, 16, %s2484_s6, [#allocation3]  }
 0xaf1   :  { %s2034_s9 = scalar_lea.hbm %s2486_s8, 16 }
 0xaf2   :  { %p2035_p6 = scmp.ne.s32.totalorder %s2486_s8, %s2034_s9  ;;  %p2038_p7 = scmp.lt.u32.totalorder %s2034_s9, %s2486_s8 }
 0xaf4   :  { %p2040_p8 = pnand %p2038_p7, %p2035_p6 }
 0xaf6   :  { %2043 = shalt.err (!%p2040_p8)
}
 0xaf7   :  { %s2064_s2 = smov [#allocation6]  }
 0xaf8   :  { %1649 = dma.smem_to_hbm %s2064_s2, 16, %s2486_s8, [#allocation5]  }
 0xaf9   :  { %2044 = dma.done.wait [#allocation3], 16  }
 0xafa   :  { %2045 = vsyncadd [#allocation3], 4294967280 }
 0xafb   :  { %2046 = dma.done.wait [#allocation5], 32  }
 0xafc   :  { %2047 = vsyncadd [#allocation5], 4294967264 }
 0xafd   :  { %1661 = sfence }
 0xafe   :  { %1662 = vsyncpa [#allocation3], 1 }
 0xaff   :  { %1663 = vsyncpa [#allocation5], 1 }

</bundles_post_ra>
